<compile_context>
chip_gen: v7x
topology: tpu7x:2x2x1
jax: 0.10.0
libtpu: 0.0.40
codegen_flags: <defaults>
</compile_context>

<pallas_src>
import math
from functools import partial

import jax
import jax.numpy as jnp
from jax.experimental import pallas as pl
from jax.experimental.pallas import tpu as pltpu

f32 = jnp.float32
bf16 = jnp.bfloat16

NC_PAD = 128  # final logits padded to a full lane tile (sliced outside)


# ------------------------------- fused kernel -------------------------------

def _elu(v):
    # PyTorch nn.ELU (alpha=1.0), f32 on VPU/EUP.
    return jnp.where(v > 0.0, v, jnp.exp(jnp.minimum(v, 0.0)) - 1.0)


def _eegnet_fused_kernel(x_ref, w2_ref, m1_ref, r2_ref, p1_ref, m2_ref, r3_ref,
                         m3_ref, r4_ref, out_ref, *, n_batch, f1, d, t_len):
    f2 = f1 * d
    blk = d * n_batch

    # --- stage 1: conv2-first (spatial), then conv1 (temporal Toeplitz) -----
    # x: (N*H, T) bf16, w2blk: (f2*N, N*H) bf16 (block-diag over batch, BN scales
    # folded)  ->  u: (f2*N, T) f32, rows = (channel c, batch n).
    u = jnp.dot(w2_ref[...], x_ref[...], preferred_element_type=jnp.float32)

    # Toeplitz of conv1 per group g lives in column block g of m1 (T, f1*T).
    zfull = jnp.dot(u.astype(bf16), m1_ref[...],
                    preferred_element_type=jnp.float32)          # (f2*N, f1*T)

    # Keep only the matching group's column block for each row block (channel-
    # stacked layout), add the folded conv/BN bias, ELU.
    a = jnp.concatenate(
        [zfull[g * blk:(g + 1) * blk, g * t_len:(g + 1) * t_len]
         for g in range(f1)], axis=0)                            # (f2*N, T)
    a = _elu(a + r2_ref[...])                                    # r2: (f2*N, 1)

    # --- pool1: AvgPool(1,4) as one MXU matmul ------------------------------
    ap = jnp.dot(a.astype(bf16), p1_ref[...],
                 preferred_element_type=jnp.float32)             # (f2*N, T4)

    # Relayout channel-stacked -> lane-dense (N, f2*T4), channel-major columns.
    ad = jnp.concatenate(
        [ap[c * n_batch:(c + 1) * n_batch, :] for c in range(f2)], axis=1)

    # --- stage 2: depthwise conv3 + 1x1 conv4 + bn3 (one matrix) + ELU ------
    h = jnp.dot(ad.astype(bf16), m2_ref[...],
                preferred_element_type=jnp.float32)              # (N, f2*T4)
    a2 = _elu(h + r3_ref[...])

    # --- stage 3: pool2 + flatten + Linear (one matrix) ---------------------
    logits = jnp.dot(a2.astype(bf16), m3_ref[...],
                     preferred_element_type=jnp.float32)         # (N, NC_PAD)
    out_ref[...] = logits + r4_ref[...]


# ------------------------- host-side operand packing ------------------------

def init_params(key, cfg):
    """Random parameters with PyTorch-like layouts (inference-mode BN stats)."""
    H, T = cfg["n_channels"], cfg["n_samples"]
    f1, d, f2, kl = cfg["f1"], cfg["d"], cfg["f2"], cfg["kernel_length"]
    ncls = cfg["n_classes"] if cfg["n_classes"] > 2 else 1
    ks = list(jax.random.split(key, 16))

    def u(k, shape, fan_in):
        b = 1.0 / math.sqrt(fan_in)
        return jax.random.uniform(k, shape, f32, -b, b)

    def bn(k, c):
        k1, k2 = jax.random.split(k)
        return dict(gamma=1.0 + 0.1 * jax.random.normal(k1, (c,), f32),
                    beta=0.1 * jax.random.normal(k2, (c,), f32),
                    mean=jnp.zeros((c,), f32), var=jnp.ones((c,), f32))

    p = {}
    p["conv1_w"] = u(ks[0], (f1, 1, 1, kl), kl)
    p["conv1_b"] = u(ks[1], (f1,), kl)
    p["bn1"] = bn(ks[2], f1)
    p["conv2_w"] = u(ks[3], (f1 * d, 1, H, 1), H)        # groups=f1 (depth mult d)
    p["conv2_b"] = u(ks[4], (f1 * d,), H)
    p["bn2"] = bn(ks[5], f1 * d)
    p["conv3_w"] = u(ks[6], (f2, 1, 1, 16), 16)          # depthwise, kernel (1,16)
    p["conv3_b"] = u(ks[7], (f2,), 16)
    p["conv4_w"] = u(ks[8], (f2, f2, 1, 1), f2)          # pointwise 1x1
    p["conv4_b"] = u(ks[9], (f2,), f2)
    p["bn3"] = bn(ks[10], f2)
    fc_in = f2 * (T // 32)
    p["fc_w"] = u(ks[11], (fc_in, ncls), fc_in)
    p["fc_b"] = u(ks[12], (ncls,), fc_in)
    return p


def prepare_operands(p, cfg):
    """Fold BN + convs + pool2/FC into dense matmul operands (one-time packing)."""
    H, T = cfg["n_channels"], cfg["n_samples"]
    f1, d, f2, kl = cfg["f1"], cfg["d"], cfg["f2"], cfg["kernel_length"]
    N = cfg["batch"]
    ncls = cfg["n_classes"] if cfg["n_classes"] > 2 else 1
    T4, T32 = T // 4, T // 32
    eps = 1e-5

    def bn_fold(bn):
        s = bn["gamma"] / jnp.sqrt(bn["var"] + eps)
        return s, bn["beta"] - bn["mean"] * s

    s1, sh1 = bn_fold(p["bn1"])
    s2, sh2 = bn_fold(p["bn2"])
    s3, sh3 = bn_fold(p["bn3"])

    # --- stage 1 -------------------------------------------------------------
    # conv2 (spatial contraction over the H EEG channels) expanded block-diag
    # over the batch; bn1/bn2 scales are folded into its rows.  Rows = (c, n).
    w2raw = p["conv2_w"][:, 0, :, 0]                               # (f2, H)
    s1_c = jnp.repeat(s1, d)                                       # per output channel c
    sh1_c = jnp.repeat(sh1, d)
    b1_c = jnp.repeat(p["conv1_b"], d)
    w2s = w2raw * (s2 * s1_c)[:, None]
    w2blk = jnp.einsum("ch,nm->cnmh", w2s,
                       jnp.eye(N, dtype=f32)).reshape(f2 * N, N * H)

    # conv1 as a time-Toeplitz right-matmul (T, f1*T), columns = (g, t_out).
    # PyTorch 'same' with even kernel: pad_left = (kl-1)//2, extra pad on right.
    w1 = p["conv1_w"][:, 0, 0, :]                                  # (f1, kl)
    padl1 = (kl - 1) // 2
    kidx = jnp.arange(T)[:, None] - jnp.arange(T)[None, :] + padl1
    valid1 = (kidx >= 0) & (kidx < kl)
    toep1 = jnp.where(valid1[None], w1[:, jnp.clip(kidx, 0, kl - 1)], 0.0)
    m1 = toep1.transpose(1, 0, 2).reshape(T, f1 * T)

    # Folded pre-ELU bias per conv2 output channel (conv1 bias + bn1 shift are
    # pushed through conv2, plus conv2 bias and bn2 shift).  Column vector.
    r2 = s2 * (p["conv2_b"] + (s1_c * b1_c + sh1_c) * w2raw.sum(axis=1)) + sh2
    r2col = jnp.repeat(r2, N).reshape(f2 * N, 1)

    # pool1 = AvgPool(1,4) as a (T, T4) matrix (applied on the MXU post-ELU).
    pool1 = ((jnp.arange(T)[:, None] // 4) ==
             jnp.arange(T4)[None, :]).astype(f32) / 4.0

    # --- stage 2: depthwise conv3 ('same', k=16) o 1x1 conv4 o bn3 ------------
    w3 = p["conv3_w"][:, 0, 0, :]                                  # (f2, 16)
    k3 = w3.shape[1]
    padl3 = (k3 - 1) // 2
    kk = jnp.arange(T4)[:, None] - jnp.arange(T4)[None, :] + padl3
    valid3 = (kk >= 0) & (kk < k3)
    c3 = jnp.where(valid3[None], w3[:, jnp.clip(kk, 0, k3 - 1)], 0.0)   # (f2,T4,T4)
    w4 = p["conv4_w"][:, :, 0, 0]                                  # (c_out, c_in)
    w4s = s3[:, None] * w4
    m2 = jnp.einsum("cio,dc->cido", c3, w4s).reshape(f2 * T4, f2 * T4)
    r3 = jnp.repeat(s3 * (p["conv4_b"] + w4 @ p["conv3_b"]) + sh3,
                    T4).reshape(1, f2 * T4)

    # --- stage 3: AvgPool(1,8) o flatten o Linear, padded to NC_PAD lanes -----
    pool2 = ((jnp.arange(T4)[:, None] // 8) ==
             jnp.arange(T32)[None, :]).astype(f32) / 8.0
    fcw = p["fc_w"].reshape(f2, T32, ncls)                         # channel-major flatten
    m3 = jnp.einsum("to,cok->ctk", pool2, fcw).reshape(f2 * T4, ncls)
    m3 = jnp.zeros((f2 * T4, NC_PAD), f32).at[:, :ncls].set(m3)
    r4 = jnp.zeros((1, NC_PAD), f32).at[0, :ncls].set(p["fc_b"])

    return dict(w2blk=w2blk.astype(bf16), m1=m1.astype(bf16), r2col=r2col,
                pool1=pool1.astype(bf16), m2=m2.astype(bf16), r3=r3,
                m3=m3.astype(bf16), r4=r4)


# --------------------------------- forward ----------------------------------

def eegnet_forward(ops, x, cfg):
    N, _, H, T = x.shape
    f1, d, f2 = cfg["f1"], cfg["d"], cfg["f2"]
    ncls = cfg["n_classes"] if cfg["n_classes"] > 2 else 1
    T4 = T // 4

    x2 = x.reshape(N * H, T).astype(bf16)   # pure-metadata reshape + cast

    def full(shape):
        return pl.BlockSpec(shape, lambda i, _s=shape: (0,) * len(_s))

    kern = partial(_eegnet_fused_kernel, n_batch=N, f1=f1, d=d, t_len=T)
    out = pl.pallas_call(
        kern,
        out_shape=jax.ShapeDtypeStruct((N, NC_PAD), jnp.float32),
        grid=(1,),
        in_specs=[
            full((N * H, T)),            # x
            full((f2 * N, N * H)),       # w2blk
            full((T, f1 * T)),           # m1
            full((f2 * N, 1)),           # r2col
            full((T, T4)),               # pool1
            full((f2 * T4, f2 * T4)),    # m2
            full((1, f2 * T4)),          # r3
            full((f2 * T4, NC_PAD)),     # m3
            full((1, NC_PAD)),           # r4
        ],
        out_specs=full((N, NC_PAD)),
        compiler_params=pltpu.CompilerParams(
            dimension_semantics=("arbitrary",),
            vmem_limit_bytes=32 * 1024 * 1024,
        ),
    )(x2, ops["w2blk"], ops["m1"], ops["r2col"], ops["pool1"], ops["m2"],
      ops["r3"], ops["m3"], ops["r4"])
    return out[:, :ncls]


# ----------------------------------- main ------------------------------------

if __name__ == "__main__":
    cfg = dict(n_samples=128, n_channels=32, f1=8, d=2, f2=16,
               kernel_length=64, n_classes=2, batch=2)
    assert cfg["f2"] == cfg["d"] * cfg["f1"]          # EEGNet default configuration
    assert cfg["n_samples"] % 32 == 0

    key = jax.random.PRNGKey(0)
    pkey, xkey = jax.random.split(key)
    params = init_params(pkey, cfg)
    ops = prepare_operands(params, cfg)               # one-time weight packing

    x = jax.random.normal(
        xkey, (cfg["batch"], 1, cfg["n_channels"], cfg["n_samples"]), f32)

    fwd = jax.jit(partial(eegnet_forward, cfg=cfg))
    out = fwd(ops, x)
    jax.block_until_ready(out)

    ncls = cfg["n_classes"] if cfg["n_classes"] > 2 else 1
    assert out.shape == (cfg["batch"], ncls), out.shape
    assert bool(jnp.all(jnp.isfinite(out)))
    print("KERNEL_OK")
</pallas_src>

<mosaic_0001>
module attributes {stable_mosaic.version = 11 : i64} {
  func.func @_eegnet_fused_kernel(%arg0: i32, %arg1: memref<64x128xbf16, #tpu.memory_space<vmem>>, %arg2: memref<32x64xbf16, #tpu.memory_space<vmem>>, %arg3: memref<128x1024xbf16, #tpu.memory_space<vmem>>, %arg4: memref<32x1xf32, #tpu.memory_space<vmem>>, %arg5: memref<128x32xbf16, #tpu.memory_space<vmem>>, %arg6: memref<512x512xbf16, #tpu.memory_space<vmem>>, %arg7: memref<1x512xf32, #tpu.memory_space<vmem>>, %arg8: memref<512x128xbf16, #tpu.memory_space<vmem>>, %arg9: memref<1x128xf32, #tpu.memory_space<vmem>>, %arg10: memref<2x128xf32, #tpu.memory_space<vmem>>) attributes {dimension_semantics = [#tpu.dimension_semantics<arbitrary>], iteration_bounds = array<i64: 1>, scalar_prefetch = 0 : i64, scratch_operands = 0 : i64, tpu.core_type = #tpu.core_type<tc>, window_params = [{pipeline_mode = #tpu.pipeline_mode<synchronous>, transform_indices = @transform_0, window_bounds = array<i64: 64, 128>}, {pipeline_mode = #tpu.pipeline_mode<synchronous>, transform_indices = @transform_1, window_bounds = array<i64: 32, 64>}, {pipeline_mode = #tpu.pipeline_mode<synchronous>, transform_indices = @transform_2, window_bounds = array<i64: 128, 1024>}, {pipeline_mode = #tpu.pipeline_mode<synchronous>, transform_indices = @transform_3, window_bounds = array<i64: 32, 1>}, {pipeline_mode = #tpu.pipeline_mode<synchronous>, transform_indices = @transform_4, window_bounds = array<i64: 128, 32>}, {pipeline_mode = #tpu.pipeline_mode<synchronous>, transform_indices = @transform_5, window_bounds = array<i64: 512, 512>}, {pipeline_mode = #tpu.pipeline_mode<synchronous>, transform_indices = @transform_6, window_bounds = array<i64: 1, 512>}, {pipeline_mode = #tpu.pipeline_mode<synchronous>, transform_indices = @transform_7, window_bounds = array<i64: 512, 128>}, {pipeline_mode = #tpu.pipeline_mode<synchronous>, transform_indices = @transform_8, window_bounds = array<i64: 1, 128>}, {pipeline_mode = #tpu.pipeline_mode<synchronous>, transform_indices = @transform_9, window_bounds = array<i64: 2, 128>}]} {
    %c0 = arith.constant 0 : index
    %c0_0 = arith.constant 0 : index
    %0 = vector.load %arg2[%c0, %c0_0] : memref<32x64xbf16, #tpu.memory_space<vmem>>, vector<32x64xbf16>
    %c0_1 = arith.constant 0 : index
    %c0_2 = arith.constant 0 : index
    %1 = vector.load %arg1[%c0_1, %c0_2] : memref<64x128xbf16, #tpu.memory_space<vmem>>, vector<64x128xbf16>
    %cst = arith.constant dense<0.000000e+00> : vector<32x128xf32>
    %2 = tpu.matmul %0, %1, %cst {dimension_numbers = #tpu.dot_dimension_numbers<[1], [0], [0], [1], [0, 0, 1, 1], [], []>} : vector<32x64xbf16>, vector<64x128xbf16>, vector<32x128xf32> -> vector<32x128xf32>
    %3 = arith.truncf %2 : vector<32x128xf32> to vector<32x128xbf16>
    %c0_3 = arith.constant 0 : index
    %c0_4 = arith.constant 0 : index
    %4 = vector.load %arg3[%c0_3, %c0_4] : memref<128x1024xbf16, #tpu.memory_space<vmem>>, vector<128x1024xbf16>
    %cst_5 = arith.constant dense<0.000000e+00> : vector<32x1024xf32>
    %5 = tpu.matmul %3, %4, %cst_5 {dimension_numbers = #tpu.dot_dimension_numbers<[1], [0], [0], [1], [0, 0, 1, 1], [], []>} : vector<32x128xbf16>, vector<128x1024xbf16>, vector<32x1024xf32> -> vector<32x1024xf32>
    %6 = vector.extract_strided_slice %5 {offsets = [0, 0], sizes = [4, 128], strides = [1, 1]} : vector<32x1024xf32> to vector<4x128xf32>
    %7 = vector.extract_strided_slice %5 {offsets = [4, 128], sizes = [4, 128], strides = [1, 1]} : vector<32x1024xf32> to vector<4x128xf32>
    %8 = vector.extract_strided_slice %5 {offsets = [8, 256], sizes = [4, 128], strides = [1, 1]} : vector<32x1024xf32> to vector<4x128xf32>
    %9 = vector.extract_strided_slice %5 {offsets = [12, 384], sizes = [4, 128], strides = [1, 1]} : vector<32x1024xf32> to vector<4x128xf32>
    %10 = vector.extract_strided_slice %5 {offsets = [16, 512], sizes = [4, 128], strides = [1, 1]} : vector<32x1024xf32> to vector<4x128xf32>
    %11 = vector.extract_strided_slice %5 {offsets = [20, 640], sizes = [4, 128], strides = [1, 1]} : vector<32x1024xf32> to vector<4x128xf32>
    %12 = vector.extract_strided_slice %5 {offsets = [24, 768], sizes = [4, 128], strides = [1, 1]} : vector<32x1024xf32> to vector<4x128xf32>
    %13 = vector.extract_strided_slice %5 {offsets = [28, 896], sizes = [4, 128], strides = [1, 1]} : vector<32x1024xf32> to vector<4x128xf32>
    %14 = tpu.concatenate %6, %7, %8, %9, %10, %11, %12, %13 in 0 : vector<4x128xf32>, vector<4x128xf32>, vector<4x128xf32>, vector<4x128xf32>, vector<4x128xf32>, vector<4x128xf32>, vector<4x128xf32>, vector<4x128xf32> -> vector<32x128xf32>
    %c0_6 = arith.constant 0 : index
    %c0_7 = arith.constant 0 : index
    %15 = vector.load %arg4[%c0_6, %c0_7] : memref<32x1xf32, #tpu.memory_space<vmem>>, vector<32x1xf32>
    %16 = vector.broadcast %15 : vector<32x1xf32> to vector<32x128xf32>
    %17 = arith.addf %14, %16 : vector<32x128xf32>
    %cst_8 = arith.constant 0.000000e+00 : f32
    %18 = vector.broadcast %cst_8 : f32 to vector<32x128xf32>
    %19 = arith.cmpf ogt, %17, %18 : vector<32x128xf32>
    %cst_9 = arith.constant 0.000000e+00 : f32
    %20 = vector.broadcast %cst_9 : f32 to vector<32x128xf32>
    %21 = arith.minimumf %17, %20 : vector<32x128xf32>
    %22 = math.exp %21 : vector<32x128xf32>
    %cst_10 = arith.constant 1.000000e+00 : f32
    %23 = vector.broadcast %cst_10 : f32 to vector<32x128xf32>
    %24 = arith.subf %22, %23 : vector<32x128xf32>
    %25 = arith.select %19, %17, %24 : vector<32x128xi1>, vector<32x128xf32>
    %26 = arith.truncf %25 : vector<32x128xf32> to vector<32x128xbf16>
    %c0_11 = arith.constant 0 : index
    %c0_12 = arith.constant 0 : index
    %27 = vector.load %arg5[%c0_11, %c0_12] : memref<128x32xbf16, #tpu.memory_space<vmem>>, vector<128x32xbf16>
    %cst_13 = arith.constant dense<0.000000e+00> : vector<32x32xf32>
    %28 = tpu.matmul %26, %27, %cst_13 {dimension_numbers = #tpu.dot_dimension_numbers<[1], [0], [0], [1], [0, 0, 1, 1], [], []>} : vector<32x128xbf16>, vector<128x32xbf16>, vector<32x32xf32> -> vector<32x32xf32>
    %29 = vector.extract_strided_slice %28 {offsets = [0, 0], sizes = [2, 32], strides = [1, 1]} : vector<32x32xf32> to vector<2x32xf32>
    %30 = vector.extract_strided_slice %28 {offsets = [2, 0], sizes = [2, 32], strides = [1, 1]} : vector<32x32xf32> to vector<2x32xf32>
    %31 = vector.extract_strided_slice %28 {offsets = [4, 0], sizes = [2, 32], strides = [1, 1]} : vector<32x32xf32> to vector<2x32xf32>
    %32 = vector.extract_strided_slice %28 {offsets = [6, 0], sizes = [2, 32], strides = [1, 1]} : vector<32x32xf32> to vector<2x32xf32>
    %33 = vector.extract_strided_slice %28 {offsets = [8, 0], sizes = [2, 32], strides = [1, 1]} : vector<32x32xf32> to vector<2x32xf32>
    %34 = vector.extract_strided_slice %28 {offsets = [10, 0], sizes = [2, 32], strides = [1, 1]} : vector<32x32xf32> to vector<2x32xf32>
    %35 = vector.extract_strided_slice %28 {offsets = [12, 0], sizes = [2, 32], strides = [1, 1]} : vector<32x32xf32> to vector<2x32xf32>
    %36 = vector.extract_strided_slice %28 {offsets = [14, 0], sizes = [2, 32], strides = [1, 1]} : vector<32x32xf32> to vector<2x32xf32>
    %37 = vector.extract_strided_slice %28 {offsets = [16, 0], sizes = [2, 32], strides = [1, 1]} : vector<32x32xf32> to vector<2x32xf32>
    %38 = vector.extract_strided_slice %28 {offsets = [18, 0], sizes = [2, 32], strides = [1, 1]} : vector<32x32xf32> to vector<2x32xf32>
    %39 = vector.extract_strided_slice %28 {offsets = [20, 0], sizes = [2, 32], strides = [1, 1]} : vector<32x32xf32> to vector<2x32xf32>
    %40 = vector.extract_strided_slice %28 {offsets = [22, 0], sizes = [2, 32], strides = [1, 1]} : vector<32x32xf32> to vector<2x32xf32>
    %41 = vector.extract_strided_slice %28 {offsets = [24, 0], sizes = [2, 32], strides = [1, 1]} : vector<32x32xf32> to vector<2x32xf32>
    %42 = vector.extract_strided_slice %28 {offsets = [26, 0], sizes = [2, 32], strides = [1, 1]} : vector<32x32xf32> to vector<2x32xf32>
    %43 = vector.extract_strided_slice %28 {offsets = [28, 0], sizes = [2, 32], strides = [1, 1]} : vector<32x32xf32> to vector<2x32xf32>
    %44 = vector.extract_strided_slice %28 {offsets = [30, 0], sizes = [2, 32], strides = [1, 1]} : vector<32x32xf32> to vector<2x32xf32>
    %45 = tpu.concatenate %29, %30, %31, %32, %33, %34, %35, %36, %37, %38, %39, %40, %41, %42, %43, %44 in 1 : vector<2x32xf32>, vector<2x32xf32>, vector<2x32xf32>, vector<2x32xf32>, vector<2x32xf32>, vector<2x32xf32>, vector<2x32xf32>, vector<2x32xf32>, vector<2x32xf32>, vector<2x32xf32>, vector<2x32xf32>, vector<2x32xf32>, vector<2x32xf32>, vector<2x32xf32>, vector<2x32xf32>, vector<2x32xf32> -> vector<2x512xf32>
    %46 = arith.truncf %45 : vector<2x512xf32> to vector<2x512xbf16>
    %c0_14 = arith.constant 0 : index
    %c0_15 = arith.constant 0 : index
    %47 = vector.load %arg6[%c0_14, %c0_15] : memref<512x512xbf16, #tpu.memory_space<vmem>>, vector<512x512xbf16>
    %cst_16 = arith.constant dense<0.000000e+00> : vector<2x512xf32>
    %48 = tpu.matmul %46, %47, %cst_16 {dimension_numbers = #tpu.dot_dimension_numbers<[1], [0], [0], [1], [0, 0, 1, 1], [], []>} : vector<2x512xbf16>, vector<512x512xbf16>, vector<2x512xf32> -> vector<2x512xf32>
    %c0_17 = arith.constant 0 : index
    %c0_18 = arith.constant 0 : index
    %49 = vector.load %arg7[%c0_17, %c0_18] : memref<1x512xf32, #tpu.memory_space<vmem>>, vector<1x512xf32>
    %50 = vector.broadcast %49 : vector<1x512xf32> to vector<2x512xf32>
    %51 = arith.addf %48, %50 : vector<2x512xf32>
    %cst_19 = arith.constant 0.000000e+00 : f32
    %52 = vector.broadcast %cst_19 : f32 to vector<2x512xf32>
    %53 = arith.cmpf ogt, %51, %52 : vector<2x512xf32>
    %cst_20 = arith.constant 0.000000e+00 : f32
    %54 = vector.broadcast %cst_20 : f32 to vector<2x512xf32>
    %55 = arith.minimumf %51, %54 : vector<2x512xf32>
    %56 = math.exp %55 : vector<2x512xf32>
    %cst_21 = arith.constant 1.000000e+00 : f32
    %57 = vector.broadcast %cst_21 : f32 to vector<2x512xf32>
    %58 = arith.subf %56, %57 : vector<2x512xf32>
    %59 = arith.select %53, %51, %58 : vector<2x512xi1>, vector<2x512xf32>
    %60 = arith.truncf %59 : vector<2x512xf32> to vector<2x512xbf16>
    %c0_22 = arith.constant 0 : index
    %c0_23 = arith.constant 0 : index
    %61 = vector.load %arg8[%c0_22, %c0_23] : memref<512x128xbf16, #tpu.memory_space<vmem>>, vector<512x128xbf16>
    %cst_24 = arith.constant dense<0.000000e+00> : vector<2x128xf32>
    %62 = tpu.matmul %60, %61, %cst_24 {dimension_numbers = #tpu.dot_dimension_numbers<[1], [0], [0], [1], [0, 0, 1, 1], [], []>} : vector<2x512xbf16>, vector<512x128xbf16>, vector<2x128xf32> -> vector<2x128xf32>
    %c0_25 = arith.constant 0 : index
    %c0_26 = arith.constant 0 : index
    %63 = vector.load %arg9[%c0_25, %c0_26] : memref<1x128xf32, #tpu.memory_space<vmem>>, vector<1x128xf32>
    %64 = vector.broadcast %63 : vector<1x128xf32> to vector<2x128xf32>
    %65 = arith.addf %62, %64 : vector<2x128xf32>
    %c0_27 = arith.constant 0 : index
    %c0_28 = arith.constant 0 : index
    %66 = vector.load %arg10[%c0_27, %c0_28] : memref<2x128xf32, #tpu.memory_space<vmem>>, vector<2x128xf32>
    tpu.vector_store %arg10[%c0_27, %c0_28], %65 {strides = array<i32>} : memref<2x128xf32, #tpu.memory_space<vmem>>, vector<2x128xf32>,
    return
  }
  func.func @transform_0(%arg0: i32) -> (i32, i32) {
    %c0_i32 = arith.constant 0 : i32
    %c0_i32_0 = arith.constant 0 : i32
    %c0_i32_1 = arith.constant 0 : i32
    return %c0_i32, %c0_i32_0 : i32, i32
  }
  func.func @transform_1(%arg0: i32) -> (i32, i32) {
    %c0_i32 = arith.constant 0 : i32
    %c0_i32_0 = arith.constant 0 : i32
    %c0_i32_1 = arith.constant 0 : i32
    return %c0_i32, %c0_i32_0 : i32, i32
  }
  func.func @transform_2(%arg0: i32) -> (i32, i32) {
    %c0_i32 = arith.constant 0 : i32
    %c0_i32_0 = arith.constant 0 : i32
    %c0_i32_1 = arith.constant 0 : i32
    return %c0_i32, %c0_i32_0 : i32, i32
  }
  func.func @transform_3(%arg0: i32) -> (i32, i32) {
    %c0_i32 = arith.constant 0 : i32
    %c0_i32_0 = arith.constant 0 : i32
    %c0_i32_1 = arith.constant 0 : i32
    return %c0_i32, %c0_i32_0 : i32, i32
  }
  func.func @transform_4(%arg0: i32) -> (i32, i32) {
    %c0_i32 = arith.constant 0 : i32
    %c0_i32_0 = arith.constant 0 : i32
    %c0_i32_1 = arith.constant 0 : i32
    return %c0_i32, %c0_i32_0 : i32, i32
  }
  func.func @transform_5(%arg0: i32) -> (i32, i32) {
    %c0_i32 = arith.constant 0 : i32
    %c0_i32_0 = arith.constant 0 : i32
    %c0_i32_1 = arith.constant 0 : i32
    return %c0_i32, %c0_i32_0 : i32, i32
  }
  func.func @transform_6(%arg0: i32) -> (i32, i32) {
    %c0_i32 = arith.constant 0 : i32
    %c0_i32_0 = arith.constant 0 : i32
    %c0_i32_1 = arith.constant 0 : i32
    return %c0_i32, %c0_i32_0 : i32, i32
  }
  func.func @transform_7(%arg0: i32) -> (i32, i32) {
    %c0_i32 = arith.constant 0 : i32
    %c0_i32_0 = arith.constant 0 : i32
    %c0_i32_1 = arith.constant 0 : i32
    return %c0_i32, %c0_i32_0 : i32, i32
  }
  func.func @transform_8(%arg0: i32) -> (i32, i32) {
    %c0_i32 = arith.constant 0 : i32
    %c0_i32_0 = arith.constant 0 : i32
    %c0_i32_1 = arith.constant 0 : i32
    return %c0_i32, %c0_i32_0 : i32, i32
  }
  func.func @transform_9(%arg0: i32) -> (i32, i32) {
    %c0_i32 = arith.constant 0 : i32
    %c0_i32_0 = arith.constant 0 : i32
    %c0_i32_1 = arith.constant 0 : i32
    return %c0_i32, %c0_i32_0 : i32, i32
  }
}

</mosaic_0001>

<bundles_post_ra>
// kernel: eegnet_forward.1
= control target key start
LH: loop header
LB: loop body
LE: loop exit
PB: predicated region body
PF: predicated region fallthrough
CT: control target
= control target key end

     0   :  { %14 = vsyncpa [#allocation3], 0  ;;  %s3261_s0 = inlined_call_operand.vmem [shape: bf16[64,128], index: 0, kind: input, shape index: {}]   ;;  %s3262_s1 = inlined_call_operand.vmem [shape: bf16[32,64], index: 1, kind: input, shape index: {}]   ;;  %s3263_s2 = inlined_call_operand.hbm [shape: bf16[128,1024], index: 2, kind: input, shape index: {}]   ;;  %s3264_s3 = inlined_call_operand.vmem [shape: f32[32,1], index: 3, kind: input, shape index: {}]   ;;  %s3265_s4 = inlined_call_operand.vmem [shape: bf16[128,32], index: 4, kind: input, shape index: {}]   ;;  %s3266_s5 = inlined_call_operand.hbm [shape: bf16[512,512], index: 5, kind: input, shape index: {}]   ;;  %s3267_s6 = inlined_call_operand.vmem [shape: f32[1,512], index: 6, kind: input, shape index: {}]   ;;  %s3268_s7 = inlined_call_operand.hbm [shape: bf16[512,128], index: 7, kind: input, shape index: {}]   ;;  %s3269_s8 = inlined_call_operand.vmem [shape: f32[1,128], index: 8, kind: input, shape index: {}]   ;;  %s3270_s9 = inlined_call_operand.vmem [shape: f32[2,128], index: 9, kind: output, shape index: {}]  }
   0x1   :  { %15 = vsyncpa [#allocation5], 0  ;;  %s3044_s30 = smov [#allocation4]   ;;  %s2974_s13 = scalar_lea.hbm %s3266_s5, 16384 }
   0x2   :  { %s41_s10 = sshll.u32 %s3044_s30, 4  ;;  %p2975_p0 = scmp.ne.s32.totalorder %s3266_s5, %s2974_s13  ;;  %s42_s10 = int_to_ptr.vmem [resolvable:$true] %s41_s10 }
   0x3   :  { %p2978_p1 = scmp.lt.u32.totalorder %s2974_s13, %s3266_s5 }
   0x5   :  { %p2980_p2 = pnand %p2978_p1, %p2975_p0 }
   0x7   :  { %2983 = shalt.err (!%p2980_p2)
}
   0x8   :  { %s2984_s18 = scalar_lea.vmem %s42_s10, 16384  ;;  %p2989_p4 = scmp.lt.s32.totalorder %s42_s10, %s42_s10 }
   0x9   :  { %p2985_p3 = scmp.ne.s32.totalorder %s42_s10, %s2984_s18  ;;  %p2990_p5 = scmp.lt.s32.totalorder %s2984_s18, %s2984_s18 }
   0xb   :  { %p2991_p6 = por %p2990_p5, %p2989_p4 }
   0xd   :  { %p2992_p7 = pnand %p2991_p6, %p2985_p3 }
   0xf   :  { %2995 = shalt.err (!%p2992_p7)
}
  0x10   :  { %s3045_s19 = smov 256   ;;  %s3046_s20 = smov 16  }
  0x11   :  { %47 = dma.hbm_to_vmem [thread:$0]  %s3266_s5, 16384, %s42_s10, [#allocation5], %s3045_s19, %s3045_s19, %s3046_s20  }
  0x12   :  { %s3047_s23 = smov [#allocation2]   ;;  %s2996_s27 = scalar_lea.hbm %s3263_s2, 8192 }
  0x13   :  { %s25_s24 = sshll.u32 %s3047_s23, 4  ;;  %p2997_p8 = scmp.ne.s32.totalorder %s3263_s2, %s2996_s27  ;;  %s26_s24 = int_to_ptr.vmem [resolvable:$true] %s25_s24 }
  0x14   :  { %p3000_p9 = scmp.lt.u32.totalorder %s2996_s27, %s3263_s2 }
  0x16   :  { %p3002_p10 = pnand %p3000_p9, %p2997_p8 }
  0x18   :  { %3005 = shalt.err (!%p3002_p10)
}
  0x19   :  { %s3006_s12 = scalar_lea.vmem %s26_s24, 8192  ;;  %p3011_p12 = scmp.lt.s32.totalorder %s26_s24, %s26_s24 }
  0x1a   :  { %p3007_p11 = scmp.ne.s32.totalorder %s26_s24, %s3006_s12  ;;  %p3012_p13 = scmp.lt.s32.totalorder %s3006_s12, %s3006_s12 }
  0x1c   :  { %p3013_p0 = por %p3012_p13, %p3011_p12 }
  0x1e   :  { %p3014_p1 = pnand %p3013_p0, %p3007_p11 }
  0x20   :  { %3017 = shalt.err (!%p3014_p1)
}
  0x21   :  { %s3048_s5 = smov 512   ;;  %s3049_s10 = smov 32  }
  0x22   :  { %31 = dma.hbm_to_vmem [thread:$0]  %s3263_s2, 8192, %s26_s24, [#allocation3], %s3048_s5, %s3048_s5, %s3049_s10  }
  0x23   :  { %s3050_s15 = smov [#allocation6]   ;;  %s3018_s19 = scalar_lea.hbm %s3268_s7, 4096 }
  0x24   :  { %s55_s16 = sshll.u32 %s3050_s15, 4  ;;  %p3019_p2 = scmp.ne.s32.totalorder %s3268_s7, %s3018_s19  ;;  %s56_s16 = int_to_ptr.vmem [resolvable:$true] %s55_s16 }
  0x25   :  { %p3022_p3 = scmp.lt.u32.totalorder %s3018_s19, %s3268_s7 }
  0x27   :  { %p3024_p4 = pnand %p3022_p3, %p3019_p2 }
  0x29   :  { %3027 = shalt.err (!%p3024_p4)
}
  0x2a   :  { %s3028_s25 = scalar_lea.vmem %s56_s16, 4096  ;;  %p3033_p6 = scmp.lt.s32.totalorder %s56_s16, %s56_s16 }
  0x2b   :  { %p3029_p5 = scmp.ne.s32.totalorder %s56_s16, %s3028_s25  ;;  %p3034_p7 = scmp.lt.s32.totalorder %s3028_s25, %s3028_s25 }
  0x2d   :  { %p3035_p8 = por %p3034_p7, %p3033_p6 }
  0x2f   :  { %p3036_p9 = pnand %p3035_p8, %p3029_p5 }
  0x31   :  { %3039 = shalt.err (!%p3036_p9)
}
  0x32   :  { %s3051_s2 = smov 64   ;;  %s3052_s24 = smov 4  }
  0x33   :  { %61 = dma.hbm_to_vmem [thread:$0]  %s3268_s7, 4096, %s56_s16, [#allocation5], %s3051_s2, %s3051_s2, %s3052_s24  }
  0x34   :  { %3040 = dma.done.wait [#allocation3], 8192  }
  0x35   :  { %3041 = vsyncadd [#allocation3], 4294959104 }
  0x36   :  { %3042 = dma.done.wait [#allocation5], 20480  }
  0x37   :  { %3043 = vsyncadd [#allocation5], 4294946816  ;;  %v2720_v0 = vld [vmem:[%s3261_s0] sm:$0xff]   ;;  %v2721_v1 = vld [vmem:[%s3261_s0 + $0x8] sm:$0xff]   ;;  %vm120_vm0 = vcmask 523264   ;;  %vm750_vm1 = vcmask 1043456  }
  0x38   :  { %2633 = vmatprep.subr.bf16.mxu0 %v2720_v0  ;;  %v2722_v2 = vld [vmem:[%s3261_s0 + $0x10] sm:$0xff]   ;;  %v2724_v3 = vld [vmem:[%s3262_s1] sm:$0xff]   ;;  %v2723_v10 = vld [vmem:[%s3261_s0 + $0x18] sm:$0xff]   ;;  %vm974_vm6 = vcmask 261120   ;;  %vm977_vm7 = vcmask 785408  }
  0x39   :  { %2634 = vmatpush3.bf16.msra.mxu0 %v2720_v0  ;;  %2641 = vmatprep.mubr.msk.bf16.mxu0 %vm120_vm0, %v2724_v3  ;;  %v178_v4 = vld [vmem:[#allocation2] sm:$0xff]  ;;  %v179_v13 = vld [vmem:[#allocation2 + $0x8] sm:$0xff] }
  0x3a   :  { %2635 = vmatprep.subr.bf16.mxu0 %v2721_v1  ;;  %v182_v5 = vld [vmem:[#allocation2 + $0x20] sm:$0xff]  ;;  %v183_v14 = vld [vmem:[#allocation2 + $0x28] sm:$0xff] }
  0x3b   :  { %v2333_v6 = vcombine.high %v178_v4, %v182_v5  ;;  %v2332_v7 = vcombine.low %v178_v4, %v182_v5  ;;  %v186_v8 = vld [vmem:[#allocation2 + $0x40] sm:$0xff]  ;;  %v2335_v18 = vcombine.high %v179_v13, %v183_v14  ;;  %v187_v21 = vld [vmem:[#allocation2 + $0x48] sm:$0xff]  ;;  %v2334_v26 = vcombine.low %v179_v13, %v183_v14 }
  0x3c   :  { %v190_v9 = vld [vmem:[#allocation2 + $0x60] sm:$0xff]  ;;  %v191_v22 = vld [vmem:[#allocation2 + $0x68] sm:$0xff]  ;;  %v3053_v14 = vmov 0  }
  0x3d   :  { %2636 = vmatpush3.bf16.msra.mxu0 %v2721_v1  ;;  %v2341_v11 = vcombine.high %v186_v8, %v190_v9  ;;  %v194_v12 = vld [vmem:[#allocation2 + $0x80] sm:$0xff]  ;;  %562 = vmatprep.subr.bf16.mxu1 %v2333_v6  ;;  %v2340_v16 = vcombine.low %v186_v8, %v190_v9  ;;  %v2725_v23 = vld [vmem:[%s3262_s1 + $0x8] sm:$0xff]   ;;  %v2343_v31 = vcombine.high %v187_v21, %v191_v22  ;;  %v180_v6 = vld [vmem:[#allocation2 + $0x10] sm:$0xff] }
  0x3e   :  { %2637 = vmatprep.subr.bf16.mxu0 %v2722_v2  ;;  %v198_v15 = vld [vmem:[#allocation2 + $0xa0] sm:$0xff]  ;;  %563 = vmatpush1.bf16.msra.mxu1 %v2332_v7  ;;  %v195_v27 = vld [vmem:[#allocation2 + $0x88] sm:$0xff]  ;;  %v2342_v35 = vcombine.low %v187_v21, %v191_v22  ;;  %v184_v7 = vld [vmem:[#allocation2 + $0x30] sm:$0xff] }
  0x3f   :  { %564 = vmatprep.subr.bf16.mxu1 %v2341_v11  ;;  %v2349_v17 = vcombine.high %v194_v12, %v198_v15  ;;  %v202_v19 = vld [vmem:[#allocation2 + $0xc0] sm:$0xff]  ;;  %v2348_v24 = vcombine.low %v194_v12, %v198_v15  ;;  %v199_v28 = vld [vmem:[#allocation2 + $0xa8] sm:$0xff]  ;;  %v181_v8 = vld [vmem:[#allocation2 + $0x18] sm:$0xff]  ;;  %v2337_v9 = vcombine.high %v180_v6, %v184_v7  ;;  %v2336_v11 = vcombine.low %v180_v6, %v184_v7 }
  0x40   :  { %v206_v20 = vld [vmem:[#allocation2 + $0xe0] sm:$0xff]  ;;  %v203_v36 = vld [vmem:[#allocation2 + $0xc8] sm:$0xff]  ;;  %v2351_v39 = vcombine.high %v195_v27, %v199_v28  ;;  %v2350_v43 = vcombine.low %v195_v27, %v199_v28  ;;  %594 = vmatprep.mubr.bf16.mxu1 %v3053_v14  ;;  %2688 = vset.pattern.permute.xlu0 %v3053_v14  ;;  %v192_v22 = vld [vmem:[#allocation2 + $0x70] sm:$0xff] }
  0x41   :  { %2638 = vmatpush3.bf16.msra.mxu0 %v2722_v2  ;;  %v210_v25 = vld [vmem:[#allocation2 + $0x100] sm:$0xff]  ;;  %v2357_v29 = vcombine.high %v202_v19, %v206_v20  ;;  %v2356_v32 = vcombine.low %v202_v19, %v206_v20  ;;  %v207_v37 = vld [vmem:[#allocation2 + $0xe8] sm:$0xff]  ;;  %2689 = vset.pattern.permute.xlu1 %v3053_v14  ;;  %v188_v20 = vld [vmem:[#allocation2 + $0x50] sm:$0xff] }
  0x42   :  { %2639 = vmatprep.subr.bf16.mxu0 %v2723_v10  ;;  %565 = vmatpush1.bf16.msra.mxu1 %v2340_v16  ;;  %v214_v30 = vld [vmem:[#allocation2 + $0x120] sm:$0xff]  ;;  %v211_v44 = vld [vmem:[#allocation2 + $0x108] sm:$0xff]  ;;  %v2359_v47 = vcombine.high %v203_v36, %v207_v37  ;;  %v2358_v49 = vcombine.low %v203_v36, %v207_v37  ;;  %v757_v16 = vld [vmem:[%s3264_s3 + $0x10] sm:$0xff] }
  0x43   :  { %566 = vmatprep.subr.bf16.mxu1 %v2349_v17  ;;  %v218_v33 = vld [vmem:[#allocation2 + $0x140] sm:$0xff]  ;;  %v2365_v38 = vcombine.high %v210_v25, %v214_v30  ;;  %v2364_v40 = vcombine.low %v210_v25, %v214_v30  ;;  %v215_v45 = vld [vmem:[#allocation2 + $0x128] sm:$0xff]  ;;  %771 = vperm.xlu1 %2689, %v757_v16   ;;  %v236_v7 = vld [vmem:[#allocation2 + $0x1d0] sm:$0xff] }
  0x44   :  { %v222_v34 = vld [vmem:[#allocation2 + $0x160] sm:$0xff]  ;;  %v219_v50 = vld [vmem:[#allocation2 + $0x148] sm:$0xff]  ;;  %v2367_v53 = vcombine.high %v211_v44, %v215_v45  ;;  %v2366_v55 = vcombine.low %v211_v44, %v215_v45 }
  0x45   :  { %2640 = vmatpush3.bf16.msra.mxu0 %v2723_v10  ;;  %v226_v41 = vld [vmem:[#allocation2 + $0x180] sm:$0xff]  ;;  %v2373_v46 = vcombine.high %v218_v33, %v222_v34  ;;  %v2372_v48 = vcombine.low %v218_v33, %v222_v34  ;;  %v223_v51 = vld [vmem:[#allocation2 + $0x168] sm:$0xff]  ;;  %v185_v10 = vld [vmem:[#allocation2 + $0x38] sm:$0xff] }
  0x46   :  { %609 = vmatprep.subr.bf16.mxu0 %v2335_v18  ;;  %567 = vmatpush1.bf16.msra.mxu1 %v2348_v24  ;;  %v230_v42 = vld [vmem:[#allocation2 + $0x1a0] sm:$0xff]  ;;  %v227_v56 = vld [vmem:[#allocation2 + $0x188] sm:$0xff]  ;;  %v2375_v58 = vcombine.high %v219_v50, %v223_v51  ;;  %v2374_v59 = vcombine.low %v219_v50, %v223_v51  ;;  %v2338_v12 = vcombine.low %v181_v8, %v185_v10  ;;  %v758_v18 = vld [vmem:[%s3264_s3 + $0x18] sm:$0xff] }
  0x47   :  { %568 = vmatprep.subr.bf16.mxu1 %v2357_v29  ;;  %v2381_v52 = vcombine.high %v226_v41, %v230_v42  ;;  %v2380_v54 = vcombine.low %v226_v41, %v230_v42  ;;  %v231_v57 = vld [vmem:[#allocation2 + $0x1a8] sm:$0xff]  ;;  %v234_v62 = vld [vmem:[#allocation2 + $0x1c0] sm:$0xff]  ;;  %v2339_v13 = vcombine.high %v181_v8, %v185_v10  ;;  %776 = vperm.xlu1 %2689, %v758_v18   ;;  %v193_v24 = vld [vmem:[#allocation2 + $0x78] sm:$0xff] }
  0x48   :  { %2642 = vmatmul.mubr.msk.bf16.vlgmr.msra.gmra.mrb[0].mxu0 %vm120_vm0, %v2725_v23  ;;  %v2383_v60 = vcombine.high %v227_v56, %v231_v57  ;;  %v2382_v61 = vcombine.low %v227_v56, %v231_v57  ;;  %v238_v63 = vld [vmem:[#allocation2 + $0x1e0] sm:$0xff]  ;;  %v235_v0 = vld [vmem:[#allocation2 + $0x1c8] sm:$0xff]  ;;  %v189_v23 = vld [vmem:[#allocation2 + $0x58] sm:$0xff]  ;;  %v2345_v29 = vcombine.high %v188_v20, %v192_v22 }
  0x49   :  { %610 = vmatpush1.bf16.msra.mxu0 %v2334_v26  ;;  %v2389_v1 = vcombine.high %v234_v62, %v238_v63  ;;  %v239_v2 = vld [vmem:[#allocation2 + $0x1e8] sm:$0xff]  ;;  %v2388_v5 = vcombine.low %v234_v62, %v238_v63  ;;  %641 = vmatprep.mubr.bf16.mxu0 %v3053_v14  ;;  %v755_v15 = vld [vmem:[%s3264_s3] sm:$0xff]  ;;  %v2347_v30 = vcombine.high %v189_v23, %v193_v24  ;;  %v197_v33 = vld [vmem:[#allocation2 + $0x98] sm:$0xff] }
  0x4a   :  { %611 = vmatprep.subr.bf16.mxu0 %v2343_v31  ;;  %569 = vmatpush1.bf16.msra.mxu1 %v2356_v32  ;;  %v2390_v3 = vcombine.low %v235_v0, %v239_v2  ;;  %v2391_v4 = vcombine.high %v235_v0, %v239_v2  ;;  %v756_v17 = vld [vmem:[%s3264_s3 + $0x8] sm:$0xff]  ;;  %v196_v31 = vld [vmem:[#allocation2 + $0x90] sm:$0xff]  ;;  %v201_v34 = vld [vmem:[#allocation2 + $0xb8] sm:$0xff]  ;;  %v2346_v36 = vcombine.low %v189_v23, %v193_v24 }
  0x4b   :  { %570 = vmatprep.subr.bf16.mxu1 %v2365_v38  ;;  %761 = vperm.xlu0 %2688, %v755_v15   ;;  %v200_v32 = vld [vmem:[#allocation2 + $0xb0] sm:$0xff]  ;;  %v2355_v38 = vcombine.high %v197_v33, %v201_v34  ;;  %v205_v41 = vld [vmem:[#allocation2 + $0xd8] sm:$0xff]  ;;  %v2354_v44 = vcombine.low %v197_v33, %v201_v34  ;;  %v2726_v18 = vld [vmem:[%s3265_s4] sm:$0xff]  }
  0x4c   :  { %v2353_v37 = vcombine.high %v196_v31, %v200_v32  ;;  %v209_v42 = vld [vmem:[#allocation2 + $0xf8] sm:$0xff]  ;;  %v224_v56 = vld [vmem:[#allocation2 + $0x170] sm:$0xff] }
  0x4d   :  { %612 = vmatpush1.bf16.msra.mxu0 %v2342_v35  ;;  %v2344_v35 = vcombine.low %v188_v20, %v192_v22  ;;  %v217_v50 = vld [vmem:[#allocation2 + $0x138] sm:$0xff]  ;;  %v228_v63 = vld [vmem:[#allocation2 + $0x190] sm:$0xff]  ;;  %v2731_v22 = vld [vmem:[%s3265_s4 + $0x28] sm:$0xff]  }
  0x4e   :  { %613 = vmatprep.subr.bf16.mxu0 %v2351_v39  ;;  %571 = vmatpush1.bf16.msra.mxu1 %v2364_v40  ;;  %v204_v39 = vld [vmem:[#allocation2 + $0xd0] sm:$0xff]  ;;  %v221_v57 = vld [vmem:[#allocation2 + $0x158] sm:$0xff] }
  0x4f   :  { %572 = vmatprep.subr.bf16.mxu1 %v2373_v46  ;;  %766 = vperm.xlu0 %2688, %v756_v17   ;;  %v208_v40 = vld [vmem:[#allocation2 + $0xf0] sm:$0xff]  ;;  %v2363_v46 = vcombine.high %v205_v41, %v209_v42  ;;  %v233_v2 = vld [vmem:[#allocation2 + $0x1b8] sm:$0xff] }
  0x50   :  { %v2361_v45 = vcombine.high %v204_v39, %v208_v40  ;;  %v2360_v51 = vcombine.low %v204_v39, %v208_v40  ;;  %v232_v0 = vld [vmem:[#allocation2 + $0x1b0] sm:$0xff]  ;;  %v241_v10 = vld [vmem:[#allocation2 + $0x1f8] sm:$0xff] }
  0x51   :  { %614 = vmatpush1.bf16.msra.mxu0 %v2350_v43  ;;  %v2352_v43 = vcombine.low %v196_v31, %v200_v32  ;;  %v240_v8 = vld [vmem:[#allocation2 + $0x1f0] sm:$0xff]  ;;  %v2729_v20 = vld [vmem:[%s3265_s4 + $0x18] sm:$0xff]  }
  0x52   :  { %615 = vmatprep.subr.bf16.mxu0 %v2359_v47  ;;  %573 = vmatpush1.bf16.msra.mxu1 %v2372_v48  ;;  %v212_v47 = vld [vmem:[#allocation2 + $0x110] sm:$0xff]  ;;  %v2392_v16 = vcombine.low %v236_v7, %v240_v8  ;;  %v2733_v24 = vld [vmem:[%s3265_s4 + $0x38] sm:$0xff]  }
  0x53   :  { %574 = vmatprep.subr.bf16.mxu1 %v2381_v52  ;;  %v216_v48 = vld [vmem:[#allocation2 + $0x130] sm:$0xff]  ;;  %v2362_v52 = vcombine.low %v205_v41, %v209_v42 }
  0x54   :  { %v2732_v23 = vld [vmem:[%s3265_s4 + $0x30] sm:$0xff]  }
  0x55   :  { %616 = vmatpush1.bf16.msra.mxu0 %v2358_v49  ;;  %v213_v49 = vld [vmem:[#allocation2 + $0x118] sm:$0xff] }
  0x56   :  { %617 = vmatprep.subr.bf16.mxu0 %v2367_v53  ;;  %575 = vmatpush1.bf16.msra.mxu1 %v2380_v54  ;;  %v2369_v53 = vcombine.high %v212_v47, %v216_v48  ;;  %v2371_v54 = vcombine.high %v213_v49, %v217_v50 }
  0x57   :  { %576 = vmatprep.subr.bf16.mxu1 %v2389_v1  ;;  %v229_v1 = vld [vmem:[#allocation2 + $0x198] sm:$0xff] }
  0x58   :  { %v2387_v6 = vcombine.high %v229_v1, %v233_v2 }
  0x59   :  { %618 = vmatpush1.bf16.msra.mxu0 %v2366_v55  ;;  %v220_v55 = vld [vmem:[#allocation2 + $0x150] sm:$0xff] }
  0x5a   :  { %619 = vmatprep.subr.bf16.mxu0 %v2375_v58  ;;  %577 = vmatpush1.bf16.msra.mxu1 %v2388_v5  ;;  %v225_v58 = vld [vmem:[#allocation2 + $0x178] sm:$0xff]  ;;  %v2385_v5 = vcombine.high %v228_v63, %v232_v0 }
  0x5b   :  { %656 = vmatprep.subr.bf16.mxu1 %v2337_v9  ;;  %v2379_v62 = vcombine.high %v221_v57, %v225_v58  ;;  %v237_v9 = vld [vmem:[#allocation2 + $0x1d8] sm:$0xff] }
  0x5c   :  { %v2395_v15 = vcombine.high %v237_v9, %v241_v10  ;;  %v2394_v17 = vcombine.low %v237_v9, %v241_v10 }
  0x5d   :  { %620 = vmatpush1.bf16.msra.mxu0 %v2374_v59  ;;  %v2368_v59 = vcombine.low %v212_v47, %v216_v48 }
  0x5e   :  { %621 = vmatprep.subr.bf16.mxu0 %v2383_v60  ;;  %v2370_v60 = vcombine.low %v213_v49, %v217_v50 }
  0x61   :  { %622 = vmatpush1.bf16.msra.mxu0 %v2382_v61  ;;  %v2377_v61 = vcombine.high %v220_v55, %v224_v56 }
  0x62   :  { %623 = vmatprep.subr.bf16.mxu0 %v2391_v4  ;;  %v2378_v4 = vcombine.low %v221_v57, %v225_v58 }
  0x65   :  { %624 = vmatpush1.bf16.msra.mxu0 %v2390_v3  ;;  %v2376_v3 = vcombine.low %v220_v55, %v224_v56 }
  0x66   :  { %703 = vmatprep.subr.bf16.mxu0 %v2339_v13  ;;  %v2393_v13 = vcombine.high %v236_v7, %v240_v8 }
 0x11b   :  { %v2643_v19 = vpop.f32.mrb[0].mxu0 }
 0x11c   :  { %v161_v21 = vpop.f32.mrb[1].mxu0 }
 0x11d   :  { %v2644_v25 = vpop.f32.mrb[2].mxu0 }
 0x11e   :  { %v3180_v26 = vpack.c.bf16 %v2644_v25, %v2643_v19  ;;  %v164_v27 = vpop.f32.mrb[3].mxu0  ;;  %v2727_v19 = vld [vmem:[%s3265_s4 + $0x8] sm:$0xff]   ;;  %v762_v25 = vpop.permute.xlu0 %761 }
 0x11f   :  { %v3182_v28 = vpack.c.bf16 %v164_v27, %v161_v21  ;;  %v2730_v21 = vld [vmem:[%s3265_s4 + $0x20] sm:$0xff]  }
 0x121   :  { %595 = vmatmul.mubr.bf16.vlgmr.msra.gmra.mrb[0].mxu1 %v3182_v28  ;;  %642 = vmatmul.mubr.bf16.vlgmr.msra.gmra.mrb[4].mxu0 %v3182_v28 }
 0x122   :  { %657 = vmatpush1.bf16.msra.mxu1 %v2336_v11  ;;  %704 = vmatpush1.bf16.msra.mxu0 %v2338_v12  ;;  %v2384_v11 = vcombine.low %v228_v63, %v232_v0  ;;  %v2386_v12 = vcombine.low %v229_v1, %v233_v2  ;;  %v772_v2 = vpop.permute.xlu1 %771 }
 0x123   :  { %658 = vmatprep.subr.bf16.mxu1 %v2345_v29  ;;  %705 = vmatprep.subr.bf16.mxu0 %v2347_v30 }
 0x124   :  { %602 = vmatprep.mubr.bf16.mxu1 %v3053_v14  ;;  %649 = vmatprep.mubr.bf16.mxu0 %v3053_v14 }
 0x126   :  { %659 = vmatpush1.bf16.msra.mxu1 %v2344_v35  ;;  %706 = vmatpush1.bf16.msra.mxu0 %v2346_v36 }
 0x127   :  { %660 = vmatprep.subr.bf16.mxu1 %v2353_v37  ;;  %707 = vmatprep.subr.bf16.mxu0 %v2355_v38 }
 0x129   :  { %603 = vmatmul.mubr.bf16.gmra.mrb[4].mxu1 %v3180_v26  ;;  %650 = vmatmul.mubr.bf16.gmra.mrb[8].mxu0 %v3180_v26 }
 0x12a   :  { %661 = vmatpush1.bf16.msra.mxu1 %v2352_v43  ;;  %708 = vmatpush1.bf16.msra.mxu0 %v2354_v44 }
 0x12b   :  { %662 = vmatprep.subr.bf16.mxu1 %v2361_v45  ;;  %709 = vmatprep.subr.bf16.mxu0 %v2363_v46 }
 0x12c   :  { %688 = vmatprep.mubr.bf16.mxu1 %v3053_v14  ;;  %735 = vmatprep.mubr.bf16.mxu0 %v3053_v14 }
 0x12e   :  { %663 = vmatpush1.bf16.msra.mxu1 %v2360_v51  ;;  %710 = vmatpush1.bf16.msra.mxu0 %v2362_v52 }
 0x12f   :  { %664 = vmatprep.subr.bf16.mxu1 %v2369_v53  ;;  %711 = vmatprep.subr.bf16.mxu0 %v2371_v54 }
 0x132   :  { %665 = vmatpush1.bf16.msra.mxu1 %v2368_v59  ;;  %712 = vmatpush1.bf16.msra.mxu0 %v2370_v60 }
 0x133   :  { %666 = vmatprep.subr.bf16.mxu1 %v2377_v61  ;;  %713 = vmatprep.subr.bf16.mxu0 %v2379_v62 }
 0x136   :  { %667 = vmatpush1.bf16.msra.mxu1 %v2376_v3  ;;  %714 = vmatpush1.bf16.msra.mxu0 %v2378_v4 }
 0x137   :  { %668 = vmatprep.subr.bf16.mxu1 %v2385_v5  ;;  %715 = vmatprep.subr.bf16.mxu0 %v2387_v6 }
 0x13a   :  { %669 = vmatpush1.bf16.msra.mxu1 %v2384_v11  ;;  %716 = vmatpush1.bf16.msra.mxu0 %v2386_v12 }
 0x13b   :  { %670 = vmatprep.subr.bf16.mxu1 %v2393_v13  ;;  %717 = vmatprep.subr.bf16.mxu0 %v2395_v15  ;;  %v777_v13 = vpop.permute.xlu1 %776 }
 0x13e   :  { %671 = vmatpush1.bf16.msra.mxu1 %v2392_v16  ;;  %718 = vmatpush1.bf16.msra.mxu0 %v2394_v17 }
 0x13f   :  { %2645 = vmatprep.subr.bf16.mxu1 %v2726_v18 }
 0x141   :  { %689 = vmatmul.mubr.bf16.vlgmr.msra.gmra.mrb[8].mxu1 %v3182_v28  ;;  %736 = vmatmul.mubr.bf16.vlgmr.msra.gmra.mrb[12].mxu0 %v3182_v28 }
 0x142   :  { %694 = vmatprep.mubr.bf16.mxu1 %v3053_v14  ;;  %741 = vmatprep.mubr.bf16.mxu0 %v3053_v14  ;;  %v2728_v14 = vld [vmem:[%s3265_s4 + $0x10] sm:$0xff]   ;;  %s3054_s4 = smov 96  }
 0x143   :  { %2646 = vmatpush3.bf16.msra.mxu1 %v2726_v18 }
 0x144   :  { %2647 = vmatprep.subr.bf16.mxu1 %v2727_v19 }
 0x147   :  { %2648 = vmatpush3.bf16.msra.mxu1 %v2727_v19 }
 0x148   :  { %2649 = vmatprep.subr.bf16.mxu1 %v2728_v14 }
 0x149   :  { %695 = vmatmul.mubr.bf16.gmra.mrb[12].mxu1 %v3180_v26  ;;  %742 = vmatmul.mubr.bf16.gmra.mrb[16].mxu0 %v3180_v26  ;;  %v767_v26 = vpop.permute.xlu0 %766 }
 0x14b   :  { %2650 = vmatpush3.bf16.msra.mxu1 %v2728_v14 }
 0x14c   :  { %2651 = vmatprep.subr.bf16.mxu1 %v2729_v20 }
 0x14f   :  { %2652 = vmatpush3.bf16.msra.mxu1 %v2729_v20 }
 0x150   :  { %2653 = vmatprep.subr.bf16.mxu1 %v2730_v21 }
 0x153   :  { %2654 = vmatpush3.bf16.msra.mxu1 %v2730_v21 }
 0x154   :  { %2655 = vmatprep.subr.bf16.mxu1 %v2731_v22 }
 0x157   :  { %2656 = vmatpush3.bf16.msra.mxu1 %v2731_v22 }
 0x158   :  { %2657 = vmatprep.subr.bf16.mxu1 %v2732_v23 }
 0x15b   :  { %2658 = vmatpush3.bf16.msra.mxu1 %v2732_v23 }
 0x15c   :  { %2659 = vmatprep.subr.bf16.mxu1 %v2733_v24 }
 0x15f   :  { %2660 = vmatpush3.bf16.msra.mxu1 %v2733_v24 }
 0x1f4   :  { %v596_v27 = vpop.f32.mrb[0].mxu1  ;;  %v643_v28 = vpop.f32.mrb[4].mxu0 }
 0x1f5   :  { %v598_v29 = vpop.f32.mrb[1].mxu1  ;;  %v644_v30 = vpop.f32.mrb[5].mxu0  ;;  %v2736_v28 = vld [vmem:[#allocation4 + $0x4] ss:$16 sps:$4 sm:$0xff]  }
 0x1f6   :  { %v751_v31 = vsel %vm750_vm1, %v596_v27, %v598_v29  ;;  %v600_v32 = vpop.f32.mrb[2].mxu1  ;;  %v645_v33 = vpop.f32.mrb[6].mxu0  ;;  %v2734_v27 = vld [vmem:[#allocation4] ss:$16 sps:$4 sm:$0xff]   ;;  %v2737_v29 = vld [vmem:[#allocation4 + $0x8] ss:$16 sps:$4 sm:$0xff]   ;;  %1782 = vmatprep.subr.bf16.mxu0 %v2736_v28 }
 0x1f7   :  { %v779_v34 = vadd.f32 %v762_v25, %v751_v31  ;;  %v601_v35 = vpop.f32.mrb[3].mxu1  ;;  %v647_v36 = vpop.f32.mrb[7].mxu0  ;;  %v2739_v30 = vld [vmem:[#allocation4 + $0xc] ss:$16 sps:$4 sm:$0xff]   ;;  %v2742_v31 = vld [vmem:[#allocation4 + $0x24] ss:$16 sps:$4 sm:$0xff]   ;;  %1783 = vmatpush1.bf16.msra.mxu0 %v2734_v27 }
 0x1f8   :  { %v752_v37 = vsel %vm750_vm1, %v645_v33, %v647_v36  ;;  %v2745_v32 = vld [vmem:[#allocation4 + $0x2c] ss:$16 sps:$4 sm:$0xff]   ;;  %1864 = vmatprep.subr.bf16.mxu1 %v2739_v30  ;;  %v2740_v33 = vld [vmem:[#allocation4 + $0x20] ss:$16 sps:$4 sm:$0xff]   ;;  %1784 = vmatprep.subr.bf16.mxu0 %v2742_v31  ;;  %v2748_v35 = vld [vmem:[#allocation4 + $0x44] ss:$16 sps:$4 sm:$0xff]  }
 0x1f9   :  { %v787_v38 = vmin.f32 %v779_v34, 0.0  ;;  %v780_v39 = vadd.f32 %v767_v26, %v752_v37  ;;  %vm783_vm3 = vcmp.gt.f32.partialorder %v779_v34, 0.0  ;;  %v2751_v36 = vld [vmem:[#allocation4 + $0x4c] ss:$16 sps:$4 sm:$0xff]   ;;  %v2746_v37 = vld [vmem:[#allocation4 + $0x40] ss:$16 sps:$4 sm:$0xff]  }
 0x1fb   :  { %v791_v40 = vmul.f32 1.442695, %v787_v38  ;;  %v788_v41 = vmin.f32 %v780_v39, 0.0  ;;  %vm784_vm2 = vcmp.gt.f32.partialorder %v780_v39, 0.0  ;;  %1785 = vmatpush1.bf16.msra.mxu0 %v2740_v33  ;;  %v2749_v38 = vld [vmem:[#allocation4 + $0x48] ss:$16 sps:$4 sm:$0xff]  }
 0x1fc   :  { %v604_v42 = vpop.f32.mrb[4].mxu1  ;;  %v651_v43 = vpop.f32.mrb[8].mxu0  ;;  %1786 = vmatprep.subr.bf16.mxu0 %v2748_v35 }
 0x1fd   :  { %2958 = vpow2.f32 %v791_v40  ;;  %v793_v44 = vmul.f32 1.442695, %v788_v41  ;;  %v605_v45 = vpop.f32.mrb[5].mxu1  ;;  %v652_v46 = vpop.f32.mrb[9].mxu0  ;;  %v2757_v40 = vld [vmem:[#allocation4 + $0x6c] ss:$16 sps:$4 sm:$0xff]  }
 0x1fe   :  { %v606_v47 = vpop.f32.mrb[6].mxu1  ;;  %v653_v48 = vpop.f32.mrb[10].mxu0  ;;  %v2752_v41 = vld [vmem:[#allocation4 + $0x60] ss:$16 sps:$4 sm:$0xff]   ;;  %v2755_v42 = vld [vmem:[#allocation4 + $0x68] ss:$16 sps:$4 sm:$0xff]  }
 0x1ff   :  { %2960 = vpow2.f32 %v793_v44  ;;  %v607_v49 = vpop.f32.mrb[7].mxu1  ;;  %v654_v50 = vpop.f32.mrb[11].mxu0  ;;  %1787 = vmatpush1.bf16.msra.mxu0 %v2746_v37  ;;  %v2760_v43 = vld [vmem:[#allocation4 + $0x84] ss:$16 sps:$4 sm:$0xff]   ;;  %v2763_v44 = vld [vmem:[#allocation4 + $0x8c] ss:$16 sps:$4 sm:$0xff]  }
 0x200   :  { %v2758_v45 = vld [vmem:[#allocation4 + $0x80] ss:$16 sps:$4 sm:$0xff]   ;;  %v2761_v46 = vld [vmem:[#allocation4 + $0x88] ss:$16 sps:$4 sm:$0xff]   ;;  %v2766_v47 = vld [vmem:[#allocation4 + $0xa4] ss:$16 sps:$4 sm:$0xff]  }
 0x201   :  { %v2769_v48 = vld [vmem:[#allocation4 + $0xac] ss:$16 sps:$4 sm:$0xff]   ;;  %v2764_v49 = vld [vmem:[#allocation4 + $0xa0] ss:$16 sps:$4 sm:$0xff]   ;;  %v2767_v50 = vld [vmem:[#allocation4 + $0xa8] ss:$16 sps:$4 sm:$0xff]  }
 0x207   :  { %v2959_v51 = vpop.eup %2958 }
 0x208   :  { %v2396_v52 = vadd.f32 -1.0, %v2959_v51  ;;  %v2772_v51 = vld [vmem:[#allocation4 + $0xc4] ss:$16 sps:$4 sm:$0xff]  }
 0x209   :  { %v2961_v53 = vpop.eup %2960 }
 0x20a   :  { %v2397_v54 = vadd.f32 -1.0, %v2961_v53  ;;  %v803_v55 = vsel %vm783_vm3, %v779_v34, %v2396_v52  ;;  %v2743_v34 = vld [vmem:[#allocation4 + $0x28] ss:$16 sps:$4 sm:$0xff]   ;;  %v2775_v52 = vld [vmem:[#allocation4 + $0xcc] ss:$16 sps:$4 sm:$0xff]  }
 0x20b   :  { %v2770_v53 = vld [vmem:[#allocation4 + $0xc0] ss:$16 sps:$4 sm:$0xff]  }
 0x20c   :  { %v804_v56 = vsel %vm784_vm2, %v780_v39, %v2397_v54  ;;  %v2754_v39 = vld [vmem:[#allocation4 + $0x64] ss:$16 sps:$4 sm:$0xff]   ;;  %v2773_v54 = vld [vmem:[#allocation4 + $0xc8] ss:$16 sps:$4 sm:$0xff]  }
 0x20d   :  { %v807_v57 = vpack.c.bf16 %v804_v56, %v803_v55  ;;  %1788 = vmatprep.subr.bf16.mxu0 %v2754_v39  ;;  %v2778_v55 = vld [vmem:[#allocation4 + $0xe4] ss:$16 sps:$4 sm:$0xff]   ;;  %v2781_v56 = vld [vmem:[#allocation4 + $0xec] ss:$16 sps:$4 sm:$0xff]  }
 0x20e   :  { %1789 = vmatpush1.bf16.msra.mxu0 %v2752_v41 }
 0x20f   :  { %2661 = vmatprep.mubr.bf16.mxu1 %v807_v57  ;;  %1790 = vmatprep.subr.bf16.mxu0 %v2760_v43  ;;  %v2776_v57 = vld [vmem:[#allocation4 + $0xe0] ss:$16 sps:$4 sm:$0xff]  }
 0x212   :  { %1791 = vmatpush1.bf16.msra.mxu0 %v2758_v45 }
 0x213   :  { %1792 = vmatprep.subr.bf16.mxu0 %v2766_v47  ;;  %v2835_v47 = vld [vmem:[#allocation4 + $0x20c] ss:$16 sps:$4 sm:$0xff]  }
 0x214   :  { %v690_v58 = vpop.f32.mrb[8].mxu1  ;;  %v737_v59 = vpop.f32.mrb[12].mxu0 }
 0x215   :  { %v691_v60 = vpop.f32.mrb[9].mxu1  ;;  %v738_v61 = vpop.f32.mrb[13].mxu0  ;;  %v2779_v58 = vld [vmem:[#allocation4 + $0xe8] ss:$16 sps:$4 sm:$0xff]   ;;  %v2784_v59 = vld [vmem:[#allocation4 + $0x104] ss:$16 sps:$4 sm:$0xff]  }
 0x216   :  { %v692_v62 = vpop.f32.mrb[10].mxu1  ;;  %v739_v63 = vpop.f32.mrb[14].mxu0  ;;  %1793 = vmatpush1.bf16.msra.mxu0 %v2764_v49  ;;  %v2787_v60 = vld [vmem:[#allocation4 + $0x10c] ss:$16 sps:$4 sm:$0xff]   ;;  %v2782_v61 = vld [vmem:[#allocation4 + $0x100] ss:$16 sps:$4 sm:$0xff]  }
 0x217   :  { %v693_v0 = vpop.f32.mrb[11].mxu1  ;;  %v740_v1 = vpop.f32.mrb[15].mxu0  ;;  %1794 = vmatprep.subr.bf16.mxu0 %v2772_v51  ;;  %v2785_v62 = vld [vmem:[#allocation4 + $0x108] ss:$16 sps:$4 sm:$0xff]   ;;  %v2790_v63 = vld [vmem:[#allocation4 + $0x124] ss:$16 sps:$4 sm:$0xff]  }
 0x218   :  { %v2793_v0 = vld [vmem:[#allocation4 + $0x12c] ss:$16 sps:$4 sm:$0xff]   ;;  %v2788_v1 = vld [vmem:[#allocation4 + $0x120] ss:$16 sps:$4 sm:$0xff]  }
 0x21a   :  { %1795 = vmatpush1.bf16.msra.mxu0 %v2770_v53 }
 0x21b   :  { %1796 = vmatprep.subr.bf16.mxu0 %v2778_v55 }
 0x21c   :  { %v696_v3 = vpop.f32.mrb[12].mxu1  ;;  %v743_v4 = vpop.f32.mrb[16].mxu0 }
 0x21d   :  { %v698_v5 = vpop.f32.mrb[13].mxu1  ;;  %v744_v6 = vpop.f32.mrb[17].mxu0  ;;  %v2799_v4 = vld [vmem:[#allocation4 + $0x14c] ss:$16 sps:$4 sm:$0xff]  }
 0x21e   :  { %v753_v7 = vsel %vm750_vm1, %v696_v3, %v698_v5  ;;  %v700_v8 = vpop.f32.mrb[14].mxu1  ;;  %v745_v9 = vpop.f32.mrb[18].mxu0  ;;  %1797 = vmatpush1.bf16.msra.mxu0 %v2776_v57  ;;  %v2796_v3 = vld [vmem:[#allocation4 + $0x144] ss:$16 sps:$4 sm:$0xff]   ;;  %v2794_v5 = vld [vmem:[#allocation4 + $0x140] ss:$16 sps:$4 sm:$0xff]  }
 0x21f   :  { %v781_v10 = vadd.f32 %v772_v2, %v753_v7  ;;  %v701_v11 = vpop.f32.mrb[15].mxu1  ;;  %v747_v12 = vpop.f32.mrb[19].mxu0  ;;  %1798 = vmatprep.subr.bf16.mxu0 %v2784_v59  ;;  %v2791_v2 = vld [vmem:[#allocation4 + $0x128] ss:$16 sps:$4 sm:$0xff]   ;;  %v2802_v7 = vld [vmem:[#allocation4 + $0x164] ss:$16 sps:$4 sm:$0xff]  }
 0x220   :  { %v754_v15 = vsel %vm750_vm1, %v745_v9, %v747_v12  ;;  %v2797_v6 = vld [vmem:[#allocation4 + $0x148] ss:$16 sps:$4 sm:$0xff]   ;;  %v2805_v8 = vld [vmem:[#allocation4 + $0x16c] ss:$16 sps:$4 sm:$0xff]   ;;  %v2800_v9 = vld [vmem:[#allocation4 + $0x160] ss:$16 sps:$4 sm:$0xff]  }
 0x221   :  { %v789_v16 = vmin.f32 %v781_v10, 0.0  ;;  %v782_v17 = vadd.f32 %v777_v13, %v754_v15  ;;  %vm785_vm4 = vcmp.gt.f32.partialorder %v781_v10, 0.0  ;;  %v2808_v11 = vld [vmem:[#allocation4 + $0x184] ss:$16 sps:$4 sm:$0xff]   ;;  %v2811_v12 = vld [vmem:[#allocation4 + $0x18c] ss:$16 sps:$4 sm:$0xff]  }
 0x222   :  { %1799 = vmatpush1.bf16.msra.mxu0 %v2782_v61  ;;  %v2806_v13 = vld [vmem:[#allocation4 + $0x180] ss:$16 sps:$4 sm:$0xff]   ;;  %v2809_v15 = vld [vmem:[#allocation4 + $0x188] ss:$16 sps:$4 sm:$0xff]  }
 0x223   :  { %v795_v18 = vmul.f32 1.442695, %v789_v16  ;;  %v790_v19 = vmin.f32 %v782_v17, 0.0  ;;  %vm786_vm5 = vcmp.gt.f32.partialorder %v782_v17, 0.0  ;;  %1800 = vmatprep.subr.bf16.mxu0 %v2790_v63  ;;  %v2814_v16 = vld [vmem:[#allocation4 + $0x1a4] ss:$16 sps:$4 sm:$0xff]  }
 0x225   :  { %2962 = vpow2.f32 %v795_v18  ;;  %v797_v14 = vmul.f32 1.442695, %v790_v19  ;;  %v2812_v18 = vld [vmem:[#allocation4 + $0x1a0] ss:$16 sps:$4 sm:$0xff]   ;;  %v2815_v19 = vld [vmem:[#allocation4 + $0x1a8] ss:$16 sps:$4 sm:$0xff]  }
 0x226   :  { %1801 = vmatpush1.bf16.msra.mxu0 %v2788_v1 }
 0x227   :  { %2964 = vpow2.f32 %v797_v14  ;;  %1802 = vmatprep.subr.bf16.mxu0 %v2796_v3  ;;  %v2820_v14 = vld [vmem:[#allocation4 + $0x1c4] ss:$16 sps:$4 sm:$0xff]  }
 0x22a   :  { %1803 = vmatpush1.bf16.msra.mxu0 %v2794_v5 }
 0x22b   :  { %1804 = vmatprep.subr.bf16.mxu0 %v2802_v7 }
 0x22e   :  { %1805 = vmatpush1.bf16.msra.mxu0 %v2800_v9 }
 0x22f   :  { %v2963_v20 = vpop.eup %2962  ;;  %1806 = vmatprep.subr.bf16.mxu0 %v2808_v11  ;;  %v2833_v11 = vld [vmem:[#allocation4 + $0x208] ss:$16 sps:$4 sm:$0xff]  }
 0x230   :  { %v2398_v21 = vadd.f32 -1.0, %v2963_v20  ;;  %v2823_v20 = vld [vmem:[#allocation4 + $0x1cc] ss:$16 sps:$4 sm:$0xff]  }
 0x231   :  { %v2965_v22 = vpop.eup %2964 }
 0x232   :  { %v2399_v23 = vadd.f32 -1.0, %v2965_v22  ;;  %v805_v24 = vsel %vm785_vm4, %v781_v10, %v2398_v21  ;;  %v2803_v10 = vld [vmem:[#allocation4 + $0x168] ss:$16 sps:$4 sm:$0xff]   ;;  %1807 = vmatpush1.bf16.msra.mxu0 %v2806_v13  ;;  %v2818_v21 = vld [vmem:[#allocation4 + $0x1c0] ss:$16 sps:$4 sm:$0xff]  }
 0x233   :  { %1808 = vmatprep.subr.bf16.mxu0 %v2814_v16  ;;  %v2821_v22 = vld [vmem:[#allocation4 + $0x1c8] ss:$16 sps:$4 sm:$0xff]  }
 0x234   :  { %v806_v25 = vsel %vm786_vm5, %v782_v17, %v2399_v23  ;;  %v2817_v17 = vld [vmem:[#allocation4 + $0x1ac] ss:$16 sps:$4 sm:$0xff]   ;;  %v2826_v23 = vld [vmem:[#allocation4 + $0x1e4] ss:$16 sps:$4 sm:$0xff]  }
 0x235   :  { %v808_v26 = vpack.c.bf16 %v806_v25, %v805_v24  ;;  %v2829_v24 = vld [vmem:[#allocation4 + $0x1ec] ss:$16 sps:$4 sm:$0xff]   ;;  %v2824_v25 = vld [vmem:[#allocation4 + $0x1e0] ss:$16 sps:$4 sm:$0xff]  }
 0x236   :  { %1809 = vmatpush1.bf16.msra.mxu0 %v2812_v18  ;;  %v2841_v18 = vld [vmem:[#allocation4 + $0x22c] ss:$16 sps:$4 sm:$0xff]  }
 0x237   :  { %2662 = vmatmul.mubr.bf16.vlgmr.msra.gmra.mrb[16].mxu1 %v808_v26  ;;  %1810 = vmatprep.subr.bf16.mxu0 %v2820_v14  ;;  %v2827_v26 = vld [vmem:[#allocation4 + $0x1e8] ss:$16 sps:$4 sm:$0xff]  }
 0x238   :  { %1865 = vmatpush1.bf16.msra.mxu1 %v2737_v29 }
 0x239   :  { %1866 = vmatprep.subr.bf16.mxu1 %v2745_v32 }
 0x23a   :  { %1811 = vmatpush1.bf16.msra.mxu0 %v2818_v21 }
 0x23b   :  { %1812 = vmatprep.subr.bf16.mxu0 %v2826_v23  ;;  %v2839_v23 = vld [vmem:[#allocation4 + $0x228] ss:$16 sps:$4 sm:$0xff]  }
 0x23c   :  { %1867 = vmatpush1.bf16.msra.mxu1 %v2743_v34  ;;  %v2832_v34 = vld [vmem:[#allocation4 + $0x204] ss:$16 sps:$4 sm:$0xff]  }
 0x23d   :  { %1868 = vmatprep.subr.bf16.mxu1 %v2751_v36 }
 0x23e   :  { %1813 = vmatpush1.bf16.msra.mxu0 %v2824_v25 }
 0x23f   :  { %1823 = vmatprep.subr.bf16.mxu0 %v2832_v34  ;;  %v2856_v34 = vld [vmem:[#allocation4 + $0x284] ss:$16 sps:$4 sm:$0xff]  }
 0x240   :  { %1869 = vmatpush1.bf16.msra.mxu1 %v2749_v38 }
 0x241   :  { %1870 = vmatprep.subr.bf16.mxu1 %v2757_v40 }
 0x244   :  { %1871 = vmatpush1.bf16.msra.mxu1 %v2755_v42 }
 0x245   :  { %1872 = vmatprep.subr.bf16.mxu1 %v2763_v44 }
 0x248   :  { %1873 = vmatpush1.bf16.msra.mxu1 %v2761_v46 }
 0x249   :  { %1874 = vmatprep.subr.bf16.mxu1 %v2769_v48 }
 0x24c   :  { %1875 = vmatpush1.bf16.msra.mxu1 %v2767_v50 }
 0x24d   :  { %1876 = vmatprep.subr.bf16.mxu1 %v2775_v52 }
 0x250   :  { %1877 = vmatpush1.bf16.msra.mxu1 %v2773_v54 }
 0x251   :  { %1878 = vmatprep.subr.bf16.mxu1 %v2781_v56 }
 0x254   :  { %1879 = vmatpush1.bf16.msra.mxu1 %v2779_v58 }
 0x255   :  { %1880 = vmatprep.subr.bf16.mxu1 %v2787_v60 }
 0x258   :  { %1881 = vmatpush1.bf16.msra.mxu1 %v2785_v62 }
 0x259   :  { %1882 = vmatprep.subr.bf16.mxu1 %v2793_v0 }
 0x25c   :  { %1883 = vmatpush1.bf16.msra.mxu1 %v2791_v2 }
 0x25d   :  { %1884 = vmatprep.subr.bf16.mxu1 %v2799_v4 }
 0x260   :  { %1885 = vmatpush1.bf16.msra.mxu1 %v2797_v6 }
 0x261   :  { %1886 = vmatprep.subr.bf16.mxu1 %v2805_v8 }
 0x264   :  { %1887 = vmatpush1.bf16.msra.mxu1 %v2803_v10  ;;  %v2830_v10 = vld [vmem:[#allocation4 + $0x200] ss:$16 sps:$4 sm:$0xff]  }
 0x265   :  { %1888 = vmatprep.subr.bf16.mxu1 %v2811_v12 }
 0x268   :  { %1889 = vmatpush1.bf16.msra.mxu1 %v2809_v15 }
 0x269   :  { %1890 = vmatprep.subr.bf16.mxu1 %v2817_v17  ;;  %v2838_v17 = vld [vmem:[#allocation4 + $0x224] ss:$16 sps:$4 sm:$0xff]  }
 0x26c   :  { %1891 = vmatpush1.bf16.msra.mxu1 %v2815_v19 }
 0x26d   :  { %1892 = vmatprep.subr.bf16.mxu1 %v2823_v20 }
 0x270   :  { %1893 = vmatpush1.bf16.msra.mxu1 %v2821_v22  ;;  %v2836_v22 = vld [vmem:[#allocation4 + $0x220] ss:$16 sps:$4 sm:$0xff]  }
 0x271   :  { %1894 = vmatprep.subr.bf16.mxu1 %v2829_v24 }
 0x274   :  { %1895 = vmatpush1.bf16.msra.mxu1 %v2827_v26  ;;  %v2844_v26 = vld [vmem:[#allocation4 + $0x244] ss:$16 sps:$4 sm:$0xff]  }
 0x275   :  { %1905 = vmatprep.subr.bf16.mxu1 %v2835_v47  ;;  %v2877_v47 = vld [vmem:[#allocation4 + $0x2ec] ss:$16 sps:$4 sm:$0xff]  }
 0x30a   :  { %v2663_v27 = vpop.f32.mrb[16].mxu1 }
 0x30b   :  { %v957_v28 = vrot.slane %v2663_v27, 6  ;;  %v907_v29 = vpop.f32.mrb[17].mxu1  ;;  %v949_v32 = vrot.slane %v2663_v27, 2  ;;  %v953_v33 = vrot.slane %v2663_v27, 4 }
 0x30c   :  { %v931_v30 = vrot.slane %v907_v29, 6  ;;  %v3226_v31 = vpop.f32.mrb[18].mxu1  ;;  %v927_v37 = vrot.slane %v907_v29, 4  ;;  %v923_v42 = vrot.slane %v907_v29, 2 }
 0x30d   :  { %v970_v35 = vrot.slane %v3226_v31, 6  ;;  %v910_v36 = vpop.f32.mrb[19].mxu1  ;;  %v962_v38 = vrot.slane %v3226_v31, 2  ;;  %v966_v39 = vrot.slane %v3226_v31, 4 }
 0x30e   :  { %v944_v40 = vrot.slane %v910_v36, 6  ;;  %v940_v41 = vrot.slane %v910_v36, 4  ;;  %v936_v43 = vrot.slane %v910_v36, 2 }
 0x30f   :  { %v2705_v44 = vpack.i.bf16 %v949_v32, %v962_v38  ;;  %v2715_v45 = vpack.i.bf16 %v957_v28, %v970_v35  ;;  %v2710_v46 = vpack.i.bf16 %v953_v33, %v966_v39  ;;  %v2842_v28 = vld [vmem:[#allocation4 + $0x240] ss:$16 sps:$4 sm:$0xff]   ;;  %v2851_v33 = vld [vmem:[#allocation4 + $0x268] ss:$16 sps:$4 sm:$0xff]   ;;  %v2859_v35 = vld [vmem:[#allocation4 + $0x28c] ss:$16 sps:$4 sm:$0xff]  }
 0x310   :  { %v2695_v48 = vpack.i.bf16 %v927_v37, %v940_v41  ;;  %v2690_v49 = vpack.i.bf16 %v923_v42, %v936_v43  ;;  %v2700_v50 = vpack.i.bf16 %v931_v30, %v944_v40  ;;  %v2850_v30 = vld [vmem:[#allocation4 + $0x264] ss:$16 sps:$4 sm:$0xff]   ;;  %v2848_v32 = vld [vmem:[#allocation4 + $0x260] ss:$16 sps:$4 sm:$0xff]   ;;  %v2857_v37 = vld [vmem:[#allocation4 + $0x288] ss:$16 sps:$4 sm:$0xff]  }
 0x311   :  { %v2862_v38 = vld [vmem:[#allocation4 + $0x2a4] ss:$16 sps:$4 sm:$0xff]   ;;  %v2865_v39 = vld [vmem:[#allocation4 + $0x2ac] ss:$16 sps:$4 sm:$0xff]   ;;  %v2860_v40 = vld [vmem:[#allocation4 + $0x2a0] ss:$16 sps:$4 sm:$0xff]  }
 0x312   :  { %2696 = vrot.lane.b32.xlu1 %v2695_v48, %s3051_s2  ;;  %2691 = vrot.lane.b32.xlu0 %v2690_v49, %s3049_s10  ;;  %v2863_v41 = vld [vmem:[#allocation4 + $0x2a8] ss:$16 sps:$4 sm:$0xff]   ;;  %v2868_v42 = vld [vmem:[#allocation4 + $0x2c4] ss:$16 sps:$4 sm:$0xff]   ;;  %v2871_v43 = vld [vmem:[#allocation4 + $0x2cc] ss:$16 sps:$4 sm:$0xff]  }
 0x313   :  { %v2872_v48 = vld [vmem:[#allocation4 + $0x2e0] ss:$16 sps:$4 sm:$0xff]   ;;  %v2875_v49 = vld [vmem:[#allocation4 + $0x2e8] ss:$16 sps:$4 sm:$0xff]  }
 0x316   :  { %2706 = vrot.lane.b32.xlu1 %v2705_v44, %s3049_s10  ;;  %2701 = vrot.lane.b32.xlu0 %v2700_v50, %s3054_s4  ;;  %v2866_v44 = vld [vmem:[#allocation4 + $0x2c0] ss:$16 sps:$4 sm:$0xff]   ;;  %v2880_v50 = vld [vmem:[#allocation4 + $0x304] ss:$16 sps:$4 sm:$0xff]  }
 0x31a   :  { %2716 = vrot.lane.b32.xlu1 %v2715_v45, %s3054_s4  ;;  %2711 = vrot.lane.b32.xlu0 %v2710_v46, %s3051_s2  ;;  %v2869_v45 = vld [vmem:[#allocation4 + $0x2c8] ss:$16 sps:$4 sm:$0xff]   ;;  %v2874_v46 = vld [vmem:[#allocation4 + $0x2e4] ss:$16 sps:$4 sm:$0xff]  }
 0x384   :  { %v2697_v51 = vpop.permute.xlu1 %2696  ;;  %v2692_v52 = vpop.permute.xlu0 %2691 }
 0x385   :  { %v2694_v53 = vunpack.i.h.bf16 %v2692_v52  ;;  %v2693_v54 = vunpack.i.l.bf16 %v2692_v52  ;;  %v2699_v55 = vunpack.i.h.bf16 %v2697_v51  ;;  %v2698_v56 = vunpack.i.l.bf16 %v2697_v51  ;;  %v2883_v51 = vld [vmem:[#allocation4 + $0x30c] ss:$16 sps:$4 sm:$0xff]   ;;  %v2878_v52 = vld [vmem:[#allocation4 + $0x300] ss:$16 sps:$4 sm:$0xff]  }
 0x387   :  { %v975_v57 = vsel %vm974_vm6, %v907_v29, %v2694_v53  ;;  %v979_v58 = vsel %vm974_vm6, %v910_v36, %v2693_v54  ;;  %v2845_v29 = vld [vmem:[#allocation4 + $0x248] ss:$16 sps:$4 sm:$0xff]   ;;  %v2854_v36 = vld [vmem:[#allocation4 + $0x280] ss:$16 sps:$4 sm:$0xff]   ;;  %v2886_v54 = vld [vmem:[#allocation4 + $0x324] ss:$16 sps:$4 sm:$0xff]  }
 0x388   :  { %v2707_v59 = vpop.permute.xlu1 %2706  ;;  %v2702_v60 = vpop.permute.xlu0 %2701  ;;  %v976_v1 = vsel %vm120_vm0, %v975_v57, %v2699_v55  ;;  %v980_v2 = vsel %vm120_vm0, %v979_v58, %v2698_v56  ;;  %v2881_v53 = vld [vmem:[#allocation4 + $0x308] ss:$16 sps:$4 sm:$0xff]   ;;  %v2889_v55 = vld [vmem:[#allocation4 + $0x32c] ss:$16 sps:$4 sm:$0xff]   ;;  %v2884_v56 = vld [vmem:[#allocation4 + $0x320] ss:$16 sps:$4 sm:$0xff]  }
 0x389   :  { %v2709_v61 = vunpack.i.h.bf16 %v2707_v59  ;;  %v2704_v62 = vunpack.i.h.bf16 %v2702_v60  ;;  %v2703_v63 = vunpack.i.l.bf16 %v2702_v60  ;;  %v2708_v0 = vunpack.i.l.bf16 %v2707_v59  ;;  %v2887_v57 = vld [vmem:[#allocation4 + $0x328] ss:$16 sps:$4 sm:$0xff]   ;;  %v2892_v58 = vld [vmem:[#allocation4 + $0x344] ss:$16 sps:$4 sm:$0xff]   ;;  %v2895_v59 = vld [vmem:[#allocation4 + $0x34c] ss:$16 sps:$4 sm:$0xff]  }
 0x38a   :  { %v2890_v60 = vld [vmem:[#allocation4 + $0x340] ss:$16 sps:$4 sm:$0xff]  }
 0x38b   :  { %v982_v3 = vsel %vm974_vm6, %v2663_v27, %v2709_v61  ;;  %v978_v4 = vsel %vm977_vm7, %v976_v1, %v2704_v62  ;;  %v981_v5 = vsel %vm977_vm7, %v980_v2, %v2703_v63  ;;  %v985_v19 = vsel %vm974_vm6, %v3226_v31, %v2708_v0  ;;  %v2847_v27 = vld [vmem:[#allocation4 + $0x24c] ss:$16 sps:$4 sm:$0xff]   ;;  %v2893_v61 = vld [vmem:[#allocation4 + $0x348] ss:$16 sps:$4 sm:$0xff]   ;;  %v2898_v62 = vld [vmem:[#allocation4 + $0x364] ss:$16 sps:$4 sm:$0xff]  }
 0x38c   :  { %v988_v6 = vpack.c.bf16 %v978_v4, %v978_v4  ;;  %v2717_v7 = vpop.permute.xlu1 %2716  ;;  %v2712_v8 = vpop.permute.xlu0 %2711  ;;  %v989_v9 = vpack.c.bf16 %v981_v5, %v981_v5  ;;  %v2853_v31 = vld [vmem:[#allocation4 + $0x26c] ss:$16 sps:$4 sm:$0xff]   ;;  %v2896_v0 = vld [vmem:[#allocation4 + $0x360] ss:$16 sps:$4 sm:$0xff]   ;;  %v2899_v1 = vld [vmem:[#allocation4 + $0x368] ss:$16 sps:$4 sm:$0xff]  }
 0x38d   :  { %v2719_v12 = vunpack.i.h.bf16 %v2717_v7  ;;  %v2718_v13 = vunpack.i.l.bf16 %v2717_v7  ;;  %v2714_v15 = vunpack.i.h.bf16 %v2712_v8  ;;  %v2713_v16 = vunpack.i.l.bf16 %v2712_v8  ;;  %v2901_v63 = vld [vmem:[#allocation4 + $0x36c] ss:$16 sps:$4 sm:$0xff]   ;;  %v2904_v2 = vld [vmem:[#allocation4 + $0x384] ss:$16 sps:$4 sm:$0xff]   ;;  %v2902_v4 = vld [vmem:[#allocation4 + $0x380] ss:$16 sps:$4 sm:$0xff]  }
 0x38e   :  { %1814 = vmatprep.mubr.bf16.mxu0 %v989_v9  ;;  %1896 = vmatprep.mubr.bf16.mxu1 %v989_v9  ;;  %v2905_v5 = vld [vmem:[#allocation4 + $0x388] ss:$16 sps:$4 sm:$0xff]   ;;  %v2913_v7 = vld [vmem:[#allocation4 + $0x3ac] ss:$16 sps:$4 sm:$0xff]   ;;  %v2908_v8 = vld [vmem:[#allocation4 + $0x3a0] ss:$16 sps:$4 sm:$0xff]  }
 0x38f   :  { %v983_v14 = vsel %vm120_vm0, %v982_v3, %v2714_v15  ;;  %v986_v20 = vsel %vm120_vm0, %v985_v19, %v2713_v16  ;;  %1815 = vmatmul.mubr.bf16.vlgmr.msra.gmra.mrb[20].mxu0 %v988_v6  ;;  %1897 = vmatmul.mubr.bf16.vlgmr.msra.gmra.mrb[20].mxu1 %v988_v6  ;;  %v2907_v3 = vld [vmem:[#allocation4 + $0x38c] ss:$16 sps:$4 sm:$0xff]   ;;  %v2910_v6 = vld [vmem:[#allocation4 + $0x3a4] ss:$16 sps:$4 sm:$0xff]   ;;  %v2911_v9 = vld [vmem:[#allocation4 + $0x3a8] ss:$16 sps:$4 sm:$0xff]  }
 0x390   :  { %v3247_v21 = vsel %vm977_vm7, %v983_v14, %v2719_v12  ;;  %1824 = vmatpush1.bf16.msra.mxu0 %v2830_v10  ;;  %1906 = vmatpush1.bf16.msra.mxu1 %v2833_v11  ;;  %v987_v24 = vsel %vm977_vm7, %v986_v20, %v2718_v13  ;;  %v2916_v10 = vld [vmem:[#allocation4 + $0x3c4] ss:$16 sps:$4 sm:$0xff]   ;;  %v2919_v11 = vld [vmem:[#allocation4 + $0x3cc] ss:$16 sps:$4 sm:$0xff]   ;;  %v2914_v12 = vld [vmem:[#allocation4 + $0x3c0] ss:$16 sps:$4 sm:$0xff]  }
 0x391   :  { %1825 = vmatprep.subr.bf16.mxu0 %v2838_v17  ;;  %1907 = vmatprep.subr.bf16.mxu1 %v2841_v18  ;;  %v991_v25 = vpack.c.bf16 %v987_v24, %v987_v24  ;;  %v2917_v13 = vld [vmem:[#allocation4 + $0x3c8] ss:$16 sps:$4 sm:$0xff]   ;;  %v2922_v15 = vld [vmem:[#allocation4 + $0x3e4] ss:$16 sps:$4 sm:$0xff]   ;;  %v2925_v16 = vld [vmem:[#allocation4 + $0x3ec] ss:$16 sps:$4 sm:$0xff]  }
 0x392   :  { %v2920_v17 = vld [vmem:[#allocation4 + $0x3e0] ss:$16 sps:$4 sm:$0xff]   ;;  %v2923_v18 = vld [vmem:[#allocation4 + $0x3e8] ss:$16 sps:$4 sm:$0xff]  }
 0x393   :  { %1855 = vmatprep.mubr.bf16.mxu0 %v991_v25  ;;  %1937 = vmatprep.mubr.bf16.mxu1 %v991_v25  ;;  %v2926_v19 = vld [vmem:[#allocation6 + $0x40] sm:$0xff]   ;;  %v2930_v24 = vld [vmem:[#allocation6 + $0x48] sm:$0xff]  }
 0x394   :  { %1826 = vmatpush1.bf16.msra.mxu0 %v2836_v22  ;;  %1908 = vmatpush1.bf16.msra.mxu1 %v2839_v23  ;;  %v2927_v14 = vld [vmem:[#allocation6 + $0xc0] sm:$0xff]   ;;  %v990_v23 = vpack.c.bf16 %v3247_v21, %v3247_v21  ;;  %v2931_v25 = vld [vmem:[#allocation6 + $0xc8] sm:$0xff]   ;;  %v2938_v21 = vld [vmem:[#allocation6 + $0x58] sm:$0xff]  }
 0x395   :  { %1827 = vmatprep.subr.bf16.mxu0 %v2844_v26  ;;  %1909 = vmatprep.subr.bf16.mxu1 %v2847_v27  ;;  %v2928_v20 = vld [vmem:[#allocation6] sm:$0xff]   ;;  %v2932_v26 = vld [vmem:[#allocation6 + $0x8] sm:$0xff]  }
 0x396   :  { %v2929_v22 = vld [vmem:[#allocation6 + $0x80] sm:$0xff]   ;;  %v2933_v27 = vld [vmem:[#allocation6 + $0x88] sm:$0xff]  }
 0x398   :  { %1828 = vmatpush1.bf16.msra.mxu0 %v2842_v28  ;;  %1910 = vmatpush1.bf16.msra.mxu1 %v2845_v29  ;;  %v2934_v28 = vld [vmem:[#allocation6 + $0x50] sm:$0xff]  }
 0x399   :  { %1829 = vmatprep.subr.bf16.mxu0 %v2850_v30  ;;  %1911 = vmatprep.subr.bf16.mxu1 %v2853_v31  ;;  %v2935_v29 = vld [vmem:[#allocation6 + $0xd0] sm:$0xff]  }
 0x39a   :  { %v2936_v30 = vld [vmem:[#allocation6 + $0x10] sm:$0xff]  }
 0x39b   :  { %v2937_v31 = vld [vmem:[#allocation6 + $0x90] sm:$0xff]  }
 0x39c   :  { %1830 = vmatpush1.bf16.msra.mxu0 %v2848_v32  ;;  %1912 = vmatpush1.bf16.msra.mxu1 %v2851_v33  ;;  %v2939_v32 = vld [vmem:[#allocation6 + $0xd8] sm:$0xff]  }
 0x39d   :  { %1831 = vmatprep.subr.bf16.mxu0 %v2856_v34  ;;  %1913 = vmatprep.subr.bf16.mxu1 %v2859_v35  ;;  %v2940_v33 = vld [vmem:[#allocation6 + $0x18] sm:$0xff]   ;;  %v2942_v35 = vld [vmem:[#allocation6 + $0x60] sm:$0xff]  }
 0x39e   :  { %v2941_v34 = vld [vmem:[#allocation6 + $0x98] sm:$0xff]  }
 0x3a0   :  { %1832 = vmatpush1.bf16.msra.mxu0 %v2854_v36  ;;  %1914 = vmatpush1.bf16.msra.mxu1 %v2857_v37  ;;  %v2943_v36 = vld [vmem:[#allocation6 + $0xe0] sm:$0xff]  }
 0x3a1   :  { %1833 = vmatprep.subr.bf16.mxu0 %v2862_v38  ;;  %1915 = vmatprep.subr.bf16.mxu1 %v2865_v39  ;;  %v2944_v37 = vld [vmem:[#allocation6 + $0x20] sm:$0xff]   ;;  %v2946_v39 = vld [vmem:[#allocation6 + $0x68] sm:$0xff]  }
 0x3a2   :  { %v2945_v38 = vld [vmem:[#allocation6 + $0xa0] sm:$0xff]  }
 0x3a4   :  { %1834 = vmatpush1.bf16.msra.mxu0 %v2860_v40  ;;  %1916 = vmatpush1.bf16.msra.mxu1 %v2863_v41  ;;  %v2947_v40 = vld [vmem:[#allocation6 + $0xe8] sm:$0xff]  }
 0x3a5   :  { %1835 = vmatprep.subr.bf16.mxu0 %v2868_v42  ;;  %1917 = vmatprep.subr.bf16.mxu1 %v2871_v43  ;;  %v2948_v41 = vld [vmem:[#allocation6 + $0x28] sm:$0xff]   ;;  %v2950_v43 = vld [vmem:[#allocation6 + $0x70] sm:$0xff]  }
 0x3a6   :  { %v2949_v42 = vld [vmem:[#allocation6 + $0xa8] sm:$0xff]  }
 0x3a8   :  { %1836 = vmatpush1.bf16.msra.mxu0 %v2866_v44  ;;  %1918 = vmatpush1.bf16.msra.mxu1 %v2869_v45  ;;  %v2951_v44 = vld [vmem:[#allocation6 + $0xf0] sm:$0xff]  }
 0x3a9   :  { %1837 = vmatprep.subr.bf16.mxu0 %v2874_v46  ;;  %1919 = vmatprep.subr.bf16.mxu1 %v2877_v47  ;;  %v2952_v45 = vld [vmem:[#allocation6 + $0x30] sm:$0xff]   ;;  %v2954_v47 = vld [vmem:[#allocation6 + $0x78] sm:$0xff]  }
 0x3aa   :  { %v2953_v46 = vld [vmem:[#allocation6 + $0xb0] sm:$0xff]  }
 0x3ac   :  { %1838 = vmatpush1.bf16.msra.mxu0 %v2872_v48  ;;  %1920 = vmatpush1.bf16.msra.mxu1 %v2875_v49  ;;  %v2955_v48 = vld [vmem:[#allocation6 + $0xf8] sm:$0xff]  }
 0x3ad   :  { %1839 = vmatprep.subr.bf16.mxu0 %v2880_v50  ;;  %1921 = vmatprep.subr.bf16.mxu1 %v2883_v51  ;;  %v2956_v49 = vld [vmem:[#allocation6 + $0x38] sm:$0xff]   ;;  %v1122_v51 = vlaneseq }
 0x3ae   :  { %v2957_v50 = vld [vmem:[#allocation6 + $0xb8] sm:$0xff]  }
 0x3b0   :  { %1840 = vmatpush1.bf16.msra.mxu0 %v2878_v52  ;;  %1922 = vmatpush1.bf16.msra.mxu1 %v2881_v53  ;;  %v1123_v52 = vshrl.u32 %v1122_v51, 7 }
 0x3b1   :  { %1841 = vmatprep.subr.bf16.mxu0 %v2886_v54  ;;  %1923 = vmatprep.subr.bf16.mxu1 %v2889_v55  ;;  %v1120_v55 = vld [vmem:[%s3267_s6] sm:$0xf] }
 0x3b2   :  { %v1124_v53 = vsub.s32 0, %v1123_v52  ;;  %v1132_v54 = vsub.s32 2, %v1123_v52 }
 0x3b4   :  { %1842 = vmatpush1.bf16.msra.mxu0 %v2884_v56  ;;  %1924 = vmatpush1.bf16.msra.mxu1 %v2887_v57  ;;  %v1128_v56 = vsub.s32 1, %v1123_v52  ;;  %v1136_v57 = vsub.s32 3, %v1123_v52 }
 0x3b5   :  { %1843 = vmatprep.subr.bf16.mxu0 %v2892_v58  ;;  %1925 = vmatprep.subr.bf16.mxu1 %v2895_v59  ;;  %v1125_v58 = vrot.slane %v1120_v55, %v1124_v53  ;;  %v1133_v59 = vrot.slane %v1120_v55, %v1132_v54 }
 0x3b8   :  { %1844 = vmatpush1.bf16.msra.mxu0 %v2890_v60  ;;  %1926 = vmatpush1.bf16.msra.mxu1 %v2893_v61  ;;  %v1129_v60 = vrot.slane %v1120_v55, %v1128_v56  ;;  %v1137_v61 = vrot.slane %v1120_v55, %v1136_v57 }
 0x3b9   :  { %1845 = vmatprep.subr.bf16.mxu0 %v2898_v62  ;;  %1927 = vmatprep.subr.bf16.mxu1 %v2901_v63 }
 0x3bc   :  { %1846 = vmatpush1.bf16.msra.mxu0 %v2896_v0  ;;  %1928 = vmatpush1.bf16.msra.mxu1 %v2899_v1 }
 0x3bd   :  { %1847 = vmatprep.subr.bf16.mxu0 %v2904_v2  ;;  %1929 = vmatprep.subr.bf16.mxu1 %v2907_v3 }
 0x3c0   :  { %1848 = vmatpush1.bf16.msra.mxu0 %v2902_v4  ;;  %1930 = vmatpush1.bf16.msra.mxu1 %v2905_v5 }
 0x3c1   :  { %1849 = vmatprep.subr.bf16.mxu0 %v2910_v6  ;;  %1931 = vmatprep.subr.bf16.mxu1 %v2913_v7 }
 0x3c4   :  { %1850 = vmatpush1.bf16.msra.mxu0 %v2908_v8  ;;  %1932 = vmatpush1.bf16.msra.mxu1 %v2911_v9 }
 0x3c5   :  { %1851 = vmatprep.subr.bf16.mxu0 %v2916_v10  ;;  %1933 = vmatprep.subr.bf16.mxu1 %v2919_v11 }
 0x3c8   :  { %1852 = vmatpush1.bf16.msra.mxu0 %v2914_v12  ;;  %1934 = vmatpush1.bf16.msra.mxu1 %v2917_v13 }
 0x3c9   :  { %1853 = vmatprep.subr.bf16.mxu0 %v2922_v15  ;;  %1935 = vmatprep.subr.bf16.mxu1 %v2925_v16 }
 0x3cc   :  { %1854 = vmatpush1.bf16.msra.mxu0 %v2920_v17  ;;  %1936 = vmatpush1.bf16.msra.mxu1 %v2923_v18 }
 0x3cd   :  { %2589 = vmatprep.subr.bf16.mxu0 %v2926_v19  ;;  %2611 = vmatprep.subr.bf16.mxu1 %v2927_v14 }
 0x3cf   :  { %1856 = vmatmul.mubr.bf16.vlgmr.msra.gmra.mrb[20].mxu0 %v990_v23  ;;  %1938 = vmatmul.mubr.bf16.vlgmr.msra.gmra.mrb[20].mxu1 %v990_v23 }
 0x3d0   :  { %2590 = vmatpush3.bf16.msra.mxu0 %v2928_v20  ;;  %2612 = vmatpush3.bf16.msra.mxu1 %v2929_v22 }
 0x3d1   :  { %2591 = vmatprep.subr.bf16.mxu0 %v2930_v24  ;;  %2613 = vmatprep.subr.bf16.mxu1 %v2931_v25 }
 0x3d4   :  { %2592 = vmatpush3.bf16.msra.mxu0 %v2932_v26  ;;  %2614 = vmatpush3.bf16.msra.mxu1 %v2933_v27 }
 0x3d5   :  { %2593 = vmatprep.subr.bf16.mxu0 %v2934_v28  ;;  %2615 = vmatprep.subr.bf16.mxu1 %v2935_v29 }
 0x3d8   :  { %2594 = vmatpush3.bf16.msra.mxu0 %v2936_v30  ;;  %2616 = vmatpush3.bf16.msra.mxu1 %v2937_v31 }
 0x3d9   :  { %2595 = vmatprep.subr.bf16.mxu0 %v2938_v21  ;;  %2617 = vmatprep.subr.bf16.mxu1 %v2939_v32 }
 0x3dc   :  { %2596 = vmatpush3.bf16.msra.mxu0 %v2940_v33  ;;  %2618 = vmatpush3.bf16.msra.mxu1 %v2941_v34 }
 0x3dd   :  { %2597 = vmatprep.subr.bf16.mxu0 %v2942_v35  ;;  %2619 = vmatprep.subr.bf16.mxu1 %v2943_v36  ;;  %v2540_v36 = vld [vmem:[%s3269_s8] ss:$0 sm:$0xff] }
 0x3e0   :  { %2598 = vmatpush3.bf16.msra.mxu0 %v2944_v37  ;;  %2620 = vmatpush3.bf16.msra.mxu1 %v2945_v38 }
 0x3e1   :  { %2599 = vmatprep.subr.bf16.mxu0 %v2946_v39  ;;  %2621 = vmatprep.subr.bf16.mxu1 %v2947_v40 }
 0x3e4   :  { %2600 = vmatpush3.bf16.msra.mxu0 %v2948_v41  ;;  %2622 = vmatpush3.bf16.msra.mxu1 %v2949_v42 }
 0x3e5   :  { %2601 = vmatprep.subr.bf16.mxu0 %v2950_v43  ;;  %2623 = vmatprep.subr.bf16.mxu1 %v2951_v44 }
 0x3e8   :  { %2602 = vmatpush3.bf16.msra.mxu0 %v2952_v45  ;;  %2624 = vmatpush3.bf16.msra.mxu1 %v2953_v46 }
 0x3e9   :  { %2603 = vmatprep.subr.bf16.mxu0 %v2954_v47  ;;  %2625 = vmatprep.subr.bf16.mxu1 %v2955_v48 }
 0x3ec   :  { %2604 = vmatpush3.bf16.msra.mxu0 %v2956_v49  ;;  %2626 = vmatpush3.bf16.msra.mxu1 %v2957_v50 }
 0x4a2   :  { %v1857_v62 = vpop.f32.mrb[20].mxu0  ;;  %v1939_v63 = vpop.f32.mrb[20].mxu1 }
 0x4a3   :  { %v2665_v0 = vadd.f32 %v1857_v62, %v1125_v58  ;;  %v2667_v1 = vadd.f32 %v1939_v63, %v1133_v59  ;;  %v1859_v2 = vpop.f32.mrb[21].mxu0  ;;  %v1941_v3 = vpop.f32.mrb[21].mxu1 }
 0x4a4   :  { %v2666_v4 = vadd.f32 %v1859_v2, %v1129_v60  ;;  %v2668_v5 = vadd.f32 %v1941_v3, %v1137_v61  ;;  %v1861_v6 = vpop.f32.mrb[22].mxu0  ;;  %v1943_v7 = vpop.f32.mrb[22].mxu1 }
 0x4a5   :  { %v1950_v8 = vmin.f32 %v2665_v0, 0.0  ;;  %v1952_v9 = vmin.f32 %v2667_v1, 0.0  ;;  %v1862_v10 = vpop.f32.mrb[23].mxu0  ;;  %v1944_v11 = vpop.f32.mrb[23].mxu1  ;;  %vm1946_vm8 = vcmp.gt.f32.partialorder %v2665_v0, 0.0  ;;  %vm1948_vm9 = vcmp.gt.f32.partialorder %v2667_v1, 0.0 }
 0x4a6   :  { %v1951_v12 = vmin.f32 %v2666_v4, 0.0  ;;  %v1953_v13 = vmin.f32 %v2668_v5, 0.0  ;;  %vm1947_vm10 = vcmp.gt.f32.partialorder %v2666_v4, 0.0  ;;  %vm1949_vm11 = vcmp.gt.f32.partialorder %v2668_v5, 0.0 }
 0x4a7   :  { %v1954_v15 = vmul.f32 1.442695, %v1950_v8  ;;  %v1958_v16 = vmul.f32 1.442695, %v1952_v9 }
 0x4a8   :  { %v1956_v17 = vmul.f32 1.442695, %v1951_v12  ;;  %v1960_v18 = vmul.f32 1.442695, %v1953_v13 }
 0x4a9   :  { %2966 = vpow2.f32 %v1954_v15 }
 0x4aa   :  { %2968 = vpow2.f32 %v1958_v16 }
 0x4ab   :  { %2970 = vpow2.f32 %v1956_v17 }
 0x4ac   :  { %2972 = vpow2.f32 %v1960_v18 }
 0x4b3   :  { %v2967_v19 = vpop.eup %2966 }
 0x4b4   :  { %v2969_v14 = vpop.eup %2968  ;;  %v2536_v20 = vadd.f32 -1.0, %v2967_v19 }
 0x4b5   :  { %v2971_v22 = vpop.eup %2970  ;;  %v2538_v23 = vadd.f32 -1.0, %v2969_v14 }
 0x4b6   :  { %v2973_v24 = vpop.eup %2972  ;;  %v2537_v25 = vadd.f32 -1.0, %v2971_v22  ;;  %v1966_v26 = vsel %vm1946_vm8, %v2665_v0, %v2536_v20 }
 0x4b7   :  { %v2539_v27 = vadd.f32 -1.0, %v2973_v24  ;;  %v1968_v28 = vsel %vm1948_vm9, %v2667_v1, %v2538_v23  ;;  %v1970_v21 = vpack.c.bf16 %v1966_v26, %v1966_v26 }
 0x4b8   :  { %v1967_v29 = vsel %vm1947_vm10, %v2666_v4, %v2537_v25  ;;  %v1972_v33 = vpack.c.bf16 %v1968_v28, %v1968_v28 }
 0x4b9   :  { %v1971_v30 = vpack.c.bf16 %v1967_v29, %v1967_v29  ;;  %v1969_v31 = vsel %vm1949_vm11, %v2668_v5, %v2539_v27 }
 0x4ba   :  { %v1973_v32 = vpack.c.bf16 %v1969_v31, %v1969_v31 }
 0x4bb   :  { %2269 = vmatprep.mubr.bf16.mxu0 %v1971_v30 }
 0x4bc   :  { %2309 = vmatprep.mubr.bf16.mxu1 %v1973_v32  ;;  %2270 = vmatmul.mubr.bf16.vlgmr.msra.gmra.mrb[24].mxu0 %v1970_v21 }
 0x4bd   :  { %2310 = vmatmul.mubr.bf16.vlgmr.msra.gmra.mrb[24].mxu1 %v1972_v33 }
 0x58f   :  { %v2605_v34 = vpop.f32.mrb[24].mxu0 }
 0x590   :  { %v2627_v35 = vpop.f32.mrb[24].mxu1  ;;  %v2606_v37 = vpop.f32.mrb[25].mxu0 }
 0x591   :  { %v2607_v38 = vadd.f32 %v2606_v37, %v2605_v34  ;;  %v2628_v39 = vpop.f32.mrb[25].mxu1  ;;  %v2608_v40 = vpop.f32.mrb[26].mxu0 }
 0x592   :  { %v2629_v41 = vadd.f32 %v2628_v39, %v2627_v35  ;;  %v2630_v42 = vpop.f32.mrb[26].mxu1  ;;  %v2609_v43 = vpop.f32.mrb[27].mxu0 }
 0x593   :  { %v2272_v44 = vadd.f32 %v2607_v38, %v2540_v36  ;;  %v2631_v45 = vpop.f32.mrb[27].mxu1 }
 0x595   :  { %v2312_v46 = vadd.f32 %v2629_v41, %v2272_v44 }
 0x597   :  { %2317 = vst [vmem:[%s3270_s9] sm:$0x3] %v2312_v46 }
 0x598   :  { %2322 = vsyncpa [#allocation3], 1 }
 0x599   :  { %2323 = vsyncpa [#allocation5], 1 }

</bundles_post_ra>
